<compile_context>
chip_gen: v7x
topology: tpu7x:2x2x1
jax: 0.10.0
libtpu: 0.0.40
codegen_flags: <defaults>
</compile_context>

<pallas_src>
import math

import jax
import jax.numpy as jnp
import numpy as np
from jax.experimental import pallas as pl
from jax.experimental.pallas import tpu as pltpu


def transformer_encoder_kernel(src_ref, wqkv_ref, bqkv_ref, wo_ref, bo_ref,
                               w1_ref, b1_ref, w2_ref, b2_ref, out_ref):
    TB, L, E = src_ref.shape
    _, _, OP = out_ref.shape

    x = src_ref[...].astype(jnp.float32)                # (TB, L, E)  f32
    x2 = x.reshape(TB * L, E)                           # (TB*L, E) matmul LHS
    xb = x2.astype(jnp.bfloat16)

    # --- fused Q/K/V projection (scale folded into the Q block) ------------
    qkv = jnp.dot(xb, wqkv_ref[...],
                  preferred_element_type=jnp.float32) + bqkv_ref[...]   # (TB*L, 3E)
    q = qkv[:, 0 * E:1 * E].reshape(TB, L, E)
    k = qkv[:, 1 * E:2 * E].reshape(TB, L, E)
    v = qkv[:, 2 * E:3 * E].reshape(TB, L, E)

    # --- single-head attention, per batch element --------------------------
    scores = jnp.einsum('ble,bke->blk',
                        q.astype(jnp.bfloat16), k.astype(jnp.bfloat16),
                        preferred_element_type=jnp.float32)             # (TB, L, L)
    m = jnp.max(scores, axis=-1, keepdims=True)
    p = jnp.exp(scores - m)
    denom = jnp.sum(p, axis=-1, keepdims=True)
    p = p * pl.reciprocal(denom, approx=True)           # EUP slot, not VALU divide

    attn = jnp.einsum('blk,bke->ble',
                      p.astype(jnp.bfloat16), v.astype(jnp.bfloat16),
                      preferred_element_type=jnp.float32)               # (TB, L, E)
    attn2 = attn.reshape(TB * L, E)
    attn2 = jnp.dot(attn2.astype(jnp.bfloat16), wo_ref[...],
                    preferred_element_type=jnp.float32) + bo_ref[...]

    # --- residual + feed-forward head (dropout = identity) -----------------
    h = x2 + attn2                                                      # f32
    f = jnp.dot(h.astype(jnp.bfloat16), w1_ref[...],
                preferred_element_type=jnp.float32) + b1_ref[...]
    f = jnp.maximum(f, 0.0)                                             # ReLU, f32
    y = jnp.dot(f.astype(jnp.bfloat16), w2_ref[...],
                preferred_element_type=jnp.float32) + b2_ref[...]       # (TB*L, OP)
    out_ref[...] = y.reshape(TB, L, OP).astype(out_ref.dtype)


def _choose_tb(N, L, target_rows=256):
    """Pack enough batch elements per step for ~256-row matmuls, but keep at
    least 2 grid steps when possible so both TensorCores (v7x) get work."""
    tb = max(1, target_rows // max(L, 1))
    tb = min(tb, N)
    while tb > 1 and -(-N // tb) < 2:
        tb //= 2
    return max(tb, 1)


def _vmem_limit_bytes(TB, L, E, F, OP, weight_buffers):
    """Tight, generation-aware scoped-VMEM budget."""
    f32, bf16 = 4, 2
    rows = TB * L
    tiles = 2 * rows * (E * f32 + OP * bf16)              # src/out double-buffered
    weights = weight_buffers * ((3 * E * E + E * E + E * F + F * OP) * bf16
                                + (3 * E + E + F + OP) * f32)
    live = (rows * 3 * E                                   # qkv
            + TB * L * L                                   # scores
            + 2 * rows * E                                 # attn, residual
            + rows * F + rows * OP) * f32                  # ffn, logits
    budget = tiles + weights + 2 * live + (4 << 20)
    try:
        cap = int(0.75 * pltpu.get_tpu_info().vmem_capacity_bytes)
    except Exception:
        cap = 48 << 20                                     # safe on v5e/v6e/v7x
    return int(max(16 << 20, min(budget, cap)))


def transformer_encoder(src, params, *, single_buffer_weights=True):
    """src: (L, N, E) seq-first, as PyTorch.  Returns (L, N, out_dim)."""
    L, N, E = src.shape
    F_ = params['w1'].shape[1]
    OP = params['w2'].shape[1]            # lane-padded output width (128)
    out_dim = params['out_dim']

    TB = _choose_tb(N, L)
    N_pad = -(-N // TB) * TB

    x = jnp.transpose(src, (1, 0, 2))     # (N, L, E) batch-first for the kernel
    if N_pad != N:
        x = jnp.concatenate(
            [x, jnp.zeros((N_pad - N, L, E), x.dtype)], axis=0)

    const2 = lambda n: (0, 0)             # weights: fetched once, stay resident
    wkw = ({'pipeline_mode': pl.Buffered(1)} if single_buffer_weights else {})

    def wspec(shape):
        return pl.BlockSpec(shape, const2, **wkw)

    out = pl.pallas_call(
        transformer_encoder_kernel,
        out_shape=jax.ShapeDtypeStruct((N_pad, L, OP), jnp.bfloat16),
        grid=(N_pad // TB,),
        in_specs=[
            pl.BlockSpec((TB, L, E), lambda n: (n, 0, 0)),  # src tile (TB batches)
            wspec((E, 3 * E)),                              # [Wq*scale | Wk | Wv]^T
            wspec((1, 3 * E)),                              # [bq*scale | bk | bv]
            wspec((E, E)),                                  # Wout^T
            wspec((1, E)),                                  # bout
            wspec((E, F_)),                                 # W1^T
            wspec((1, F_)),                                 # b1
            wspec((F_, OP)),                                # W2^T (lane-padded)
            wspec((1, OP)),                                 # b2   (lane-padded)
        ],
        out_specs=pl.BlockSpec((TB, L, OP), lambda n: (n, 0, 0)),
        compiler_params=pltpu.CompilerParams(
            dimension_semantics=("parallel",),
            vmem_limit_bytes=_vmem_limit_bytes(
                TB, L, E, F_, OP, 1 if single_buffer_weights else 2)),
    )(x, params['wqkv'], params['bqkv'], params['wo'], params['bo'],
      params['w1'], params['b1'], params['w2'], params['b2'])

    out = out[:N]                                   # drop batch padding
    out = jnp.transpose(out, (1, 0, 2))             # (L, N, OP)
    return out[..., :out_dim].astype(src.dtype)     # drop lane padding -> (L, N, 3)


def make_params(key, d_model, dim_ff, out_dim=3, lane_pad=128):
    """Synthetic PyTorch-style parameters, pre-transposed for x @ W, with the
    Q/K/V projection fused into one (E, 3E) block, the 1/sqrt(E) attention
    scale folded into the Q part, bf16 weights, and the final projection
    lane-padded to a multiple of 128."""
    E, F_ = d_model, dim_ff
    ks = jax.random.split(key, 8)
    s_e = 1.0 / math.sqrt(d_model)
    s_f = 1.0 / math.sqrt(dim_ff)
    in_proj_w = jax.random.uniform(ks[0], (3 * E, E), minval=-s_e, maxval=s_e)
    in_proj_b = jax.random.uniform(ks[1], (3 * E,), minval=-s_e, maxval=s_e)
    out_proj_w = jax.random.uniform(ks[2], (E, E), minval=-s_e, maxval=s_e)
    out_proj_b = jax.random.uniform(ks[3], (E,), minval=-s_e, maxval=s_e)
    lin1_w = jax.random.uniform(ks[4], (F_, E), minval=-s_e, maxval=s_e)
    lin1_b = jax.random.uniform(ks[5], (F_,), minval=-s_e, maxval=s_e)
    lin2_w = jax.random.uniform(ks[6], (out_dim, F_), minval=-s_f, maxval=s_f)
    lin2_b = jax.random.uniform(ks[7], (out_dim,), minval=-s_f, maxval=s_f)

    scale = 1.0 / math.sqrt(E)            # nhead=1 -> head_dim = E
    wq = in_proj_w[0 * E:1 * E].T * scale
    wk = in_proj_w[1 * E:2 * E].T
    wv = in_proj_w[2 * E:3 * E].T
    bq = in_proj_b[0 * E:1 * E] * scale
    bk = in_proj_b[1 * E:2 * E]
    bv = in_proj_b[2 * E:3 * E]

    OP = ((out_dim + lane_pad - 1) // lane_pad) * lane_pad
    w2p = jnp.zeros((F_, OP), jnp.float32).at[:, :out_dim].set(lin2_w.T)
    b2p = jnp.zeros((1, OP), jnp.float32).at[0, :out_dim].set(lin2_b)

    bf16 = jnp.bfloat16
    return {
        'wqkv': jnp.concatenate([wq, wk, wv], axis=1).astype(bf16),   # (E, 3E)
        'bqkv': jnp.concatenate([bq, bk, bv])[None, :],               # (1, 3E) f32
        'wo': out_proj_w.T.astype(bf16), 'bo': out_proj_b[None, :],
        'w1': lin1_w.T.astype(bf16), 'b1': lin1_b[None, :],
        'w2': w2p.astype(bf16), 'b2': b2p,
        'out_dim': out_dim,
    }


def reference_forward(src, p):
    """Pure-JAX f32 reference mirroring PyTorch eval-mode semantics on the
    same (bf16-stored) weights."""
    f32 = jnp.float32
    E = p['wqkv'].shape[0]
    x = jnp.transpose(src, (1, 0, 2)).astype(f32)             # (N, L, E)
    wqkv = p['wqkv'].astype(f32)
    wq, wk, wv = wqkv[:, :E], wqkv[:, E:2 * E], wqkv[:, 2 * E:]
    bqkv = p['bqkv']
    bq, bk, bv = bqkv[:, :E], bqkv[:, E:2 * E], bqkv[:, 2 * E:]
    wo, w1, w2 = p['wo'].astype(f32), p['w1'].astype(f32), p['w2'].astype(f32)
    q = x @ wq + bq                                           # scale already folded
    k = x @ wk + bk
    v = x @ wv + bv
    scores = jnp.einsum('nqe,nke->nqk', q, k)
    attn = jax.nn.softmax(scores, axis=-1)
    o = jnp.einsum('nqk,nke->nqe', attn, v) @ wo + p['bo']
    h = x + o
    f = jnp.maximum(h @ w1 + p['b1'], 0.0)
    y = f @ w2 + p['b2']
    return jnp.transpose(y, (1, 0, 2))[..., :p['out_dim']]


if __name__ == "__main__":
    # Small correctness config (real model: d_model=768, dim_ff=2048; tune TB /
    # VMEM budget / benchmarks at that scale, where E and F are multiples of 128).
    D_MODEL, NHEAD, DIM_FF = 32, 1, 64
    SEQ, BATCH = 8, 5          # exercises TB=2 packing, multi-step grid, N padding

    key = jax.random.PRNGKey(0)
    k_src, k_par = jax.random.split(key)
    src = jax.random.normal(k_src, (SEQ, BATCH, D_MODEL), dtype=jnp.float32)
    params = make_params(k_par, D_MODEL, DIM_FF, out_dim=3)

    try:
        out = jax.block_until_ready(transformer_encoder(src, params))
    except Exception:
        # Fallback if this jax build rejects pipeline_mode=pl.Buffered(1) on
        # the outer pallas_call BlockSpecs (weights then double-buffered).
        out = jax.block_until_ready(
            transformer_encoder(src, params, single_buffer_weights=False))
    ref = reference_forward(src, params)

    # bf16 MXU inputs / bf16 output tile + approx reciprocal -> ~1e-2 agreement.
    np.testing.assert_allclose(np.asarray(out), np.asarray(ref),
                               rtol=3e-2, atol=3e-2)
    assert out.shape == (SEQ, BATCH, 3)
    print("KERNEL_OK")
</pallas_src>

<mosaic_0001>
module attributes {stable_mosaic.version = 11 : i64} {
  func.func @transformer_encoder_kernel(%arg0: i32, %arg1: memref<2x8x32xf32, #tpu.memory_space<vmem>>, %arg2: memref<32x96xbf16, #tpu.memory_space<vmem>>, %arg3: memref<1x96xf32, #tpu.memory_space<vmem>>, %arg4: memref<32x32xbf16, #tpu.memory_space<vmem>>, %arg5: memref<1x32xf32, #tpu.memory_space<vmem>>, %arg6: memref<32x64xbf16, #tpu.memory_space<vmem>>, %arg7: memref<1x64xf32, #tpu.memory_space<vmem>>, %arg8: memref<64x128xbf16, #tpu.memory_space<vmem>>, %arg9: memref<1x128xf32, #tpu.memory_space<vmem>>, %arg10: memref<2x8x128xbf16, #tpu.memory_space<vmem>>) attributes {dimension_semantics = [#tpu.dimension_semantics<parallel>], iteration_bounds = array<i64: 3>, scalar_prefetch = 0 : i64, scratch_operands = 0 : i64, tpu.core_type = #tpu.core_type<tc>, window_params = [{transform_indices = @transform_0, window_bounds = array<i64: 2, 8, 32>}, {pipeline_mode = #tpu.pipeline_mode<synchronous>, transform_indices = @transform_1, window_bounds = array<i64: 32, 96>}, {pipeline_mode = #tpu.pipeline_mode<synchronous>, transform_indices = @transform_2, window_bounds = array<i64: 1, 96>}, {pipeline_mode = #tpu.pipeline_mode<synchronous>, transform_indices = @transform_3, window_bounds = array<i64: 32, 32>}, {pipeline_mode = #tpu.pipeline_mode<synchronous>, transform_indices = @transform_4, window_bounds = array<i64: 1, 32>}, {pipeline_mode = #tpu.pipeline_mode<synchronous>, transform_indices = @transform_5, window_bounds = array<i64: 32, 64>}, {pipeline_mode = #tpu.pipeline_mode<synchronous>, transform_indices = @transform_6, window_bounds = array<i64: 1, 64>}, {pipeline_mode = #tpu.pipeline_mode<synchronous>, transform_indices = @transform_7, window_bounds = array<i64: 64, 128>}, {pipeline_mode = #tpu.pipeline_mode<synchronous>, transform_indices = @transform_8, window_bounds = array<i64: 1, 128>}, {transform_indices = @transform_9, window_bounds = array<i64: 2, 8, 128>}]} {
    %c0 = arith.constant 0 : index
    %c0_0 = arith.constant 0 : index
    %c0_1 = arith.constant 0 : index
    %0 = vector.load %arg1[%c0, %c0_0, %c0_1] : memref<2x8x32xf32, #tpu.memory_space<vmem>>, vector<2x8x32xf32>
    %1 = vector.shape_cast %0 : vector<2x8x32xf32> to vector<16x32xf32>
    %2 = arith.truncf %1 : vector<16x32xf32> to vector<16x32xbf16>
    %c0_2 = arith.constant 0 : index
    %c0_3 = arith.constant 0 : index
    %3 = vector.load %arg2[%c0_2, %c0_3] : memref<32x96xbf16, #tpu.memory_space<vmem>>, vector<32x96xbf16>
    %cst = arith.constant dense<0.000000e+00> : vector<16x96xf32>
    %4 = tpu.matmul %2, %3, %cst {dimension_numbers = #tpu.dot_dimension_numbers<[1], [0], [0], [1], [0, 0, 1, 1], [], []>} : vector<16x32xbf16>, vector<32x96xbf16>, vector<16x96xf32> -> vector<16x96xf32>
    %c0_4 = arith.constant 0 : index
    %c0_5 = arith.constant 0 : index
    %5 = vector.load %arg3[%c0_4, %c0_5] : memref<1x96xf32, #tpu.memory_space<vmem>>, vector<1x96xf32>
    %6 = vector.broadcast %5 : vector<1x96xf32> to vector<16x96xf32>
    %7 = arith.addf %4, %6 : vector<16x96xf32>
    %8 = vector.extract_strided_slice %7 {offsets = [0, 0], sizes = [16, 32], strides = [1, 1]} : vector<16x96xf32> to vector<16x32xf32>
    %9 = vector.shape_cast %8 : vector<16x32xf32> to vector<2x8x32xf32>
    %10 = vector.extract_strided_slice %7 {offsets = [0, 32], sizes = [16, 32], strides = [1, 1]} : vector<16x96xf32> to vector<16x32xf32>
    %11 = vector.shape_cast %10 : vector<16x32xf32> to vector<2x8x32xf32>
    %12 = vector.extract_strided_slice %7 {offsets = [0, 64], sizes = [16, 32], strides = [1, 1]} : vector<16x96xf32> to vector<16x32xf32>
    %13 = vector.shape_cast %12 : vector<16x32xf32> to vector<2x8x32xf32>
    %14 = arith.truncf %9 : vector<2x8x32xf32> to vector<2x8x32xbf16>
    %15 = arith.truncf %11 : vector<2x8x32xf32> to vector<2x8x32xbf16>
    "tpu.trace_start"() <{level = 10 : i32, message = "ble,bke->blk"}> : () -> ()
    %cst_6 = arith.constant dense<0.000000e+00> : vector<2x8x8xf32>
    %16 = tpu.matmul %14, %15, %cst_6 {dimension_numbers = #tpu.dot_dimension_numbers<[2], [2], [1], [1], [0, 0, 0, 1, 1, 1], [0], [0]>} : vector<2x8x32xbf16>, vector<2x8x32xbf16>, vector<2x8x8xf32> -> vector<2x8x8xf32>
    "tpu.trace_stop"() : () -> ()
    %cst_7 = arith.constant dense<0xFF800000> : vector<2x8xf32>
    %17 = vector.multi_reduction <maximumf>, %16, %cst_7 [2] : vector<2x8x8xf32> to vector<2x8xf32>
    %18 = vector.shape_cast %17 : vector<2x8xf32> to vector<2x8x1xf32>
    %19 = vector.broadcast %18 : vector<2x8x1xf32> to vector<2x8x8xf32>
    %20 = arith.subf %16, %19 : vector<2x8x8xf32>
    %21 = math.exp %20 : vector<2x8x8xf32>
    %cst_8 = arith.constant dense<0.000000e+00> : vector<2x8xf32>
    %22 = vector.multi_reduction <add>, %21, %cst_8 [2] : vector<2x8x8xf32> to vector<2x8xf32>
    %23 = vector.shape_cast %22 : vector<2x8xf32> to vector<2x8x1xf32>
    %24 = tpu.reciprocal %23 {approx = true} : vector<2x8x1xf32> -> vector<2x8x1xf32>
    %25 = vector.broadcast %24 : vector<2x8x1xf32> to vector<2x8x8xf32>
    %26 = arith.mulf %21, %25 : vector<2x8x8xf32>
    %27 = arith.truncf %26 : vector<2x8x8xf32> to vector<2x8x8xbf16>
    %28 = arith.truncf %13 : vector<2x8x32xf32> to vector<2x8x32xbf16>
    "tpu.trace_start"() <{level = 10 : i32, message = "blk,bke->ble"}> : () -> ()
    %cst_9 = arith.constant dense<0.000000e+00> : vector<2x8x32xf32>
    %29 = tpu.matmul %27, %28, %cst_9 {dimension_numbers = #tpu.dot_dimension_numbers<[2], [1], [1], [2], [0, 0, 0, 1, 1, 2], [0], [0]>} : vector<2x8x8xbf16>, vector<2x8x32xbf16>, vector<2x8x32xf32> -> vector<2x8x32xf32>
    "tpu.trace_stop"() : () -> ()
    %30 = vector.shape_cast %29 : vector<2x8x32xf32> to vector<16x32xf32>
    %31 = arith.truncf %30 : vector<16x32xf32> to vector<16x32xbf16>
    %c0_10 = arith.constant 0 : index
    %c0_11 = arith.constant 0 : index
    %32 = vector.load %arg4[%c0_10, %c0_11] : memref<32x32xbf16, #tpu.memory_space<vmem>>, vector<32x32xbf16>
    %cst_12 = arith.constant dense<0.000000e+00> : vector<16x32xf32>
    %33 = tpu.matmul %31, %32, %cst_12 {dimension_numbers = #tpu.dot_dimension_numbers<[1], [0], [0], [1], [0, 0, 1, 1], [], []>} : vector<16x32xbf16>, vector<32x32xbf16>, vector<16x32xf32> -> vector<16x32xf32>
    %c0_13 = arith.constant 0 : index
    %c0_14 = arith.constant 0 : index
    %34 = vector.load %arg5[%c0_13, %c0_14] : memref<1x32xf32, #tpu.memory_space<vmem>>, vector<1x32xf32>
    %35 = vector.broadcast %34 : vector<1x32xf32> to vector<16x32xf32>
    %36 = arith.addf %33, %35 : vector<16x32xf32>
    %37 = arith.addf %1, %36 : vector<16x32xf32>
    %38 = arith.truncf %37 : vector<16x32xf32> to vector<16x32xbf16>
    %c0_15 = arith.constant 0 : index
    %c0_16 = arith.constant 0 : index
    %39 = vector.load %arg6[%c0_15, %c0_16] : memref<32x64xbf16, #tpu.memory_space<vmem>>, vector<32x64xbf16>
    %cst_17 = arith.constant dense<0.000000e+00> : vector<16x64xf32>
    %40 = tpu.matmul %38, %39, %cst_17 {dimension_numbers = #tpu.dot_dimension_numbers<[1], [0], [0], [1], [0, 0, 1, 1], [], []>} : vector<16x32xbf16>, vector<32x64xbf16>, vector<16x64xf32> -> vector<16x64xf32>
    %c0_18 = arith.constant 0 : index
    %c0_19 = arith.constant 0 : index
    %41 = vector.load %arg7[%c0_18, %c0_19] : memref<1x64xf32, #tpu.memory_space<vmem>>, vector<1x64xf32>
    %42 = vector.broadcast %41 : vector<1x64xf32> to vector<16x64xf32>
    %43 = arith.addf %40, %42 : vector<16x64xf32>
    %cst_20 = arith.constant 0.000000e+00 : f32
    %44 = vector.broadcast %cst_20 : f32 to vector<16x64xf32>
    %45 = arith.maximumf %43, %44 : vector<16x64xf32>
    %46 = arith.truncf %45 : vector<16x64xf32> to vector<16x64xbf16>
    %c0_21 = arith.constant 0 : index
    %c0_22 = arith.constant 0 : index
    %47 = vector.load %arg8[%c0_21, %c0_22] : memref<64x128xbf16, #tpu.memory_space<vmem>>, vector<64x128xbf16>
    %cst_23 = arith.constant dense<0.000000e+00> : vector<16x128xf32>
    %48 = tpu.matmul %46, %47, %cst_23 {dimension_numbers = #tpu.dot_dimension_numbers<[1], [0], [0], [1], [0, 0, 1, 1], [], []>} : vector<16x64xbf16>, vector<64x128xbf16>, vector<16x128xf32> -> vector<16x128xf32>
    %c0_24 = arith.constant 0 : index
    %c0_25 = arith.constant 0 : index
    %49 = vector.load %arg9[%c0_24, %c0_25] : memref<1x128xf32, #tpu.memory_space<vmem>>, vector<1x128xf32>
    %50 = vector.broadcast %49 : vector<1x128xf32> to vector<16x128xf32>
    %51 = arith.addf %48, %50 : vector<16x128xf32>
    %52 = vector.shape_cast %51 : vector<16x128xf32> to vector<2x8x128xf32>
    %53 = arith.truncf %52 : vector<2x8x128xf32> to vector<2x8x128xbf16>
    %c0_26 = arith.constant 0 : index
    %c0_27 = arith.constant 0 : index
    %c0_28 = arith.constant 0 : index
    %54 = vector.load %arg10[%c0_26, %c0_27, %c0_28] : memref<2x8x128xbf16, #tpu.memory_space<vmem>>, vector<2x8x128xbf16>
    tpu.vector_store %arg10[%c0_26, %c0_27, %c0_28], %53 {strides = array<i32>} : memref<2x8x128xbf16, #tpu.memory_space<vmem>>, vector<2x8x128xbf16>,
    return
  }
  func.func @transform_0(%arg0: i32) -> (i32, i32, i32) {
    %c0_i32 = arith.constant 0 : i32
    %c0_i32_0 = arith.constant 0 : i32
    %c0_i32_1 = arith.constant 0 : i32
    return %arg0, %c0_i32, %c0_i32_0 : i32, i32, i32
  }
  func.func @transform_1(%arg0: i32) -> (i32, i32) {
    %c0_i32 = arith.constant 0 : i32
    %c0_i32_0 = arith.constant 0 : i32
    %c0_i32_1 = arith.constant 0 : i32
    return %c0_i32, %c0_i32_0 : i32, i32
  }
  func.func @transform_2(%arg0: i32) -> (i32, i32) {
    %c0_i32 = arith.constant 0 : i32
    %c0_i32_0 = arith.constant 0 : i32
    %c0_i32_1 = arith.constant 0 : i32
    return %c0_i32, %c0_i32_0 : i32, i32
  }
  func.func @transform_3(%arg0: i32) -> (i32, i32) {
    %c0_i32 = arith.constant 0 : i32
    %c0_i32_0 = arith.constant 0 : i32
    %c0_i32_1 = arith.constant 0 : i32
    return %c0_i32, %c0_i32_0 : i32, i32
  }
  func.func @transform_4(%arg0: i32) -> (i32, i32) {
    %c0_i32 = arith.constant 0 : i32
    %c0_i32_0 = arith.constant 0 : i32
    %c0_i32_1 = arith.constant 0 : i32
    return %c0_i32, %c0_i32_0 : i32, i32
  }
  func.func @transform_5(%arg0: i32) -> (i32, i32) {
    %c0_i32 = arith.constant 0 : i32
    %c0_i32_0 = arith.constant 0 : i32
    %c0_i32_1 = arith.constant 0 : i32
    return %c0_i32, %c0_i32_0 : i32, i32
  }
  func.func @transform_6(%arg0: i32) -> (i32, i32) {
    %c0_i32 = arith.constant 0 : i32
    %c0_i32_0 = arith.constant 0 : i32
    %c0_i32_1 = arith.constant 0 : i32
    return %c0_i32, %c0_i32_0 : i32, i32
  }
  func.func @transform_7(%arg0: i32) -> (i32, i32) {
    %c0_i32 = arith.constant 0 : i32
    %c0_i32_0 = arith.constant 0 : i32
    %c0_i32_1 = arith.constant 0 : i32
    return %c0_i32, %c0_i32_0 : i32, i32
  }
  func.func @transform_8(%arg0: i32) -> (i32, i32) {
    %c0_i32 = arith.constant 0 : i32
    %c0_i32_0 = arith.constant 0 : i32
    %c0_i32_1 = arith.constant 0 : i32
    return %c0_i32, %c0_i32_0 : i32, i32
  }
  func.func @transform_9(%arg0: i32) -> (i32, i32, i32) {
    %c0_i32 = arith.constant 0 : i32
    %c0_i32_0 = arith.constant 0 : i32
    %c0_i32_1 = arith.constant 0 : i32
    return %arg0, %c0_i32, %c0_i32_0 : i32, i32, i32
  }
}

module attributes {stable_mosaic.version = 11 : i64} {
  func.func @transformer_encoder_kernel(%arg0: i32, %arg1: memref<2x8x32xf32, #tpu.memory_space<vmem>>, %arg2: memref<32x96xbf16, #tpu.memory_space<vmem>>, %arg3: memref<1x96xf32, #tpu.memory_space<vmem>>, %arg4: memref<32x32xbf16, #tpu.memory_space<vmem>>, %arg5: memref<1x32xf32, #tpu.memory_space<vmem>>, %arg6: memref<32x64xbf16, #tpu.memory_space<vmem>>, %arg7: memref<1x64xf32, #tpu.memory_space<vmem>>, %arg8: memref<64x128xbf16, #tpu.memory_space<vmem>>, %arg9: memref<1x128xf32, #tpu.memory_space<vmem>>, %arg10: memref<2x8x128xbf16, #tpu.memory_space<vmem>>) attributes {dimension_semantics = [#tpu.dimension_semantics<parallel>], iteration_bounds = array<i64: 3>, scalar_prefetch = 0 : i64, scratch_operands = 0 : i64, tpu.core_type = #tpu.core_type<tc>, window_params = [{transform_indices = @transform_0, window_bounds = array<i64: 2, 8, 32>}, {pipeline_mode = #tpu.pipeline_mode<synchronous>, transform_indices = @transform_1, window_bounds = array<i64: 32, 96>}, {pipeline_mode = #tpu.pipeline_mode<synchronous>, transform_indices = @transform_2, window_bounds = array<i64: 1, 96>}, {pipeline_mode = #tpu.pipeline_mode<synchronous>, transform_indices = @transform_3, window_bounds = array<i64: 32, 32>}, {pipeline_mode = #tpu.pipeline_mode<synchronous>, transform_indices = @transform_4, window_bounds = array<i64: 1, 32>}, {pipeline_mode = #tpu.pipeline_mode<synchronous>, transform_indices = @transform_5, window_bounds = array<i64: 32, 64>}, {pipeline_mode = #tpu.pipeline_mode<synchronous>, transform_indices = @transform_6, window_bounds = array<i64: 1, 64>}, {pipeline_mode = #tpu.pipeline_mode<synchronous>, transform_indices = @transform_7, window_bounds = array<i64: 64, 128>}, {pipeline_mode = #tpu.pipeline_mode<synchronous>, transform_indices = @transform_8, window_bounds = array<i64: 1, 128>}, {transform_indices = @transform_9, window_bounds = array<i64: 2, 8, 128>}]} {
    %c0 = arith.constant 0 : index
    %c0_0 = arith.constant 0 : index
    %c0_1 = arith.constant 0 : index
    %0 = vector.load %arg1[%c0, %c0_0, %c0_1] : memref<2x8x32xf32, #tpu.memory_space<vmem>>, vector<2x8x32xf32>
    %1 = vector.shape_cast %0 : vector<2x8x32xf32> to vector<16x32xf32>
    %2 = arith.truncf %1 : vector<16x32xf32> to vector<16x32xbf16>
    %c0_2 = arith.constant 0 : index
    %c0_3 = arith.constant 0 : index
    %3 = vector.load %arg2[%c0_2, %c0_3] : memref<32x96xbf16, #tpu.memory_space<vmem>>, vector<32x96xbf16>
    %cst = arith.constant dense<0.000000e+00> : vector<16x96xf32>
    %4 = tpu.matmul %2, %3, %cst {dimension_numbers = #tpu.dot_dimension_numbers<[1], [0], [0], [1], [0, 0, 1, 1], [], []>} : vector<16x32xbf16>, vector<32x96xbf16>, vector<16x96xf32> -> vector<16x96xf32>
    %c0_4 = arith.constant 0 : index
    %c0_5 = arith.constant 0 : index
    %5 = vector.load %arg3[%c0_4, %c0_5] : memref<1x96xf32, #tpu.memory_space<vmem>>, vector<1x96xf32>
    %6 = vector.broadcast %5 : vector<1x96xf32> to vector<16x96xf32>
    %7 = arith.addf %4, %6 : vector<16x96xf32>
    %8 = vector.extract_strided_slice %7 {offsets = [0, 0], sizes = [16, 32], strides = [1, 1]} : vector<16x96xf32> to vector<16x32xf32>
    %9 = vector.shape_cast %8 : vector<16x32xf32> to vector<2x8x32xf32>
    %10 = vector.extract_strided_slice %7 {offsets = [0, 32], sizes = [16, 32], strides = [1, 1]} : vector<16x96xf32> to vector<16x32xf32>
    %11 = vector.shape_cast %10 : vector<16x32xf32> to vector<2x8x32xf32>
    %12 = vector.extract_strided_slice %7 {offsets = [0, 64], sizes = [16, 32], strides = [1, 1]} : vector<16x96xf32> to vector<16x32xf32>
    %13 = vector.shape_cast %12 : vector<16x32xf32> to vector<2x8x32xf32>
    %14 = arith.truncf %9 : vector<2x8x32xf32> to vector<2x8x32xbf16>
    %15 = arith.truncf %11 : vector<2x8x32xf32> to vector<2x8x32xbf16>
    "tpu.trace_start"() <{level = 10 : i32, message = "ble,bke->blk"}> : () -> ()
    %cst_6 = arith.constant dense<0.000000e+00> : vector<2x8x8xf32>
    %16 = tpu.matmul %14, %15, %cst_6 {dimension_numbers = #tpu.dot_dimension_numbers<[2], [2], [1], [1], [0, 0, 0, 1, 1, 1], [0], [0]>} : vector<2x8x32xbf16>, vector<2x8x32xbf16>, vector<2x8x8xf32> -> vector<2x8x8xf32>
    "tpu.trace_stop"() : () -> ()
    %cst_7 = arith.constant dense<0xFF800000> : vector<2x8xf32>
    %17 = vector.multi_reduction <maximumf>, %16, %cst_7 [2] : vector<2x8x8xf32> to vector<2x8xf32>
    %18 = vector.shape_cast %17 : vector<2x8xf32> to vector<2x8x1xf32>
    %19 = vector.broadcast %18 : vector<2x8x1xf32> to vector<2x8x8xf32>
    %20 = arith.subf %16, %19 : vector<2x8x8xf32>
    %21 = math.exp %20 : vector<2x8x8xf32>
    %cst_8 = arith.constant dense<0.000000e+00> : vector<2x8xf32>
    %22 = vector.multi_reduction <add>, %21, %cst_8 [2] : vector<2x8x8xf32> to vector<2x8xf32>
    %23 = vector.shape_cast %22 : vector<2x8xf32> to vector<2x8x1xf32>
    %24 = tpu.reciprocal %23 {approx = true} : vector<2x8x1xf32> -> vector<2x8x1xf32>
    %25 = vector.broadcast %24 : vector<2x8x1xf32> to vector<2x8x8xf32>
    %26 = arith.mulf %21, %25 : vector<2x8x8xf32>
    %27 = arith.truncf %26 : vector<2x8x8xf32> to vector<2x8x8xbf16>
    %28 = arith.truncf %13 : vector<2x8x32xf32> to vector<2x8x32xbf16>
    "tpu.trace_start"() <{level = 10 : i32, message = "blk,bke->ble"}> : () -> ()
    %cst_9 = arith.constant dense<0.000000e+00> : vector<2x8x32xf32>
    %29 = tpu.matmul %27, %28, %cst_9 {dimension_numbers = #tpu.dot_dimension_numbers<[2], [1], [1], [2], [0, 0, 0, 1, 1, 2], [0], [0]>} : vector<2x8x8xbf16>, vector<2x8x32xbf16>, vector<2x8x32xf32> -> vector<2x8x32xf32>
    "tpu.trace_stop"() : () -> ()
    %30 = vector.shape_cast %29 : vector<2x8x32xf32> to vector<16x32xf32>
    %31 = arith.truncf %30 : vector<16x32xf32> to vector<16x32xbf16>
    %c0_10 = arith.constant 0 : index
    %c0_11 = arith.constant 0 : index
    %32 = vector.load %arg4[%c0_10, %c0_11] : memref<32x32xbf16, #tpu.memory_space<vmem>>, vector<32x32xbf16>
    %cst_12 = arith.constant dense<0.000000e+00> : vector<16x32xf32>
    %33 = tpu.matmul %31, %32, %cst_12 {dimension_numbers = #tpu.dot_dimension_numbers<[1], [0], [0], [1], [0, 0, 1, 1], [], []>} : vector<16x32xbf16>, vector<32x32xbf16>, vector<16x32xf32> -> vector<16x32xf32>
    %c0_13 = arith.constant 0 : index
    %c0_14 = arith.constant 0 : index
    %34 = vector.load %arg5[%c0_13, %c0_14] : memref<1x32xf32, #tpu.memory_space<vmem>>, vector<1x32xf32>
    %35 = vector.broadcast %34 : vector<1x32xf32> to vector<16x32xf32>
    %36 = arith.addf %33, %35 : vector<16x32xf32>
    %37 = arith.addf %1, %36 : vector<16x32xf32>
    %38 = arith.truncf %37 : vector<16x32xf32> to vector<16x32xbf16>
    %c0_15 = arith.constant 0 : index
    %c0_16 = arith.constant 0 : index
    %39 = vector.load %arg6[%c0_15, %c0_16] : memref<32x64xbf16, #tpu.memory_space<vmem>>, vector<32x64xbf16>
    %cst_17 = arith.constant dense<0.000000e+00> : vector<16x64xf32>
    %40 = tpu.matmul %38, %39, %cst_17 {dimension_numbers = #tpu.dot_dimension_numbers<[1], [0], [0], [1], [0, 0, 1, 1], [], []>} : vector<16x32xbf16>, vector<32x64xbf16>, vector<16x64xf32> -> vector<16x64xf32>
    %c0_18 = arith.constant 0 : index
    %c0_19 = arith.constant 0 : index
    %41 = vector.load %arg7[%c0_18, %c0_19] : memref<1x64xf32, #tpu.memory_space<vmem>>, vector<1x64xf32>
    %42 = vector.broadcast %41 : vector<1x64xf32> to vector<16x64xf32>
    %43 = arith.addf %40, %42 : vector<16x64xf32>
    %cst_20 = arith.constant 0.000000e+00 : f32
    %44 = vector.broadcast %cst_20 : f32 to vector<16x64xf32>
    %45 = arith.maximumf %43, %44 : vector<16x64xf32>
    %46 = arith.truncf %45 : vector<16x64xf32> to vector<16x64xbf16>
    %c0_21 = arith.constant 0 : index
    %c0_22 = arith.constant 0 : index
    %47 = vector.load %arg8[%c0_21, %c0_22] : memref<64x128xbf16, #tpu.memory_space<vmem>>, vector<64x128xbf16>
    %cst_23 = arith.constant dense<0.000000e+00> : vector<16x128xf32>
    %48 = tpu.matmul %46, %47, %cst_23 {dimension_numbers = #tpu.dot_dimension_numbers<[1], [0], [0], [1], [0, 0, 1, 1], [], []>} : vector<16x64xbf16>, vector<64x128xbf16>, vector<16x128xf32> -> vector<16x128xf32>
    %c0_24 = arith.constant 0 : index
    %c0_25 = arith.constant 0 : index
    %49 = vector.load %arg9[%c0_24, %c0_25] : memref<1x128xf32, #tpu.memory_space<vmem>>, vector<1x128xf32>
    %50 = vector.broadcast %49 : vector<1x128xf32> to vector<16x128xf32>
    %51 = arith.addf %48, %50 : vector<16x128xf32>
    %52 = vector.shape_cast %51 : vector<16x128xf32> to vector<2x8x128xf32>
    %53 = arith.truncf %52 : vector<2x8x128xf32> to vector<2x8x128xbf16>
    %c0_26 = arith.constant 0 : index
    %c0_27 = arith.constant 0 : index
    %c0_28 = arith.constant 0 : index
    %54 = vector.load %arg10[%c0_26, %c0_27, %c0_28] : memref<2x8x128xbf16, #tpu.memory_space<vmem>>, vector<2x8x128xbf16>
    tpu.vector_store %arg10[%c0_26, %c0_27, %c0_28], %53 {strides = array<i32>} : memref<2x8x128xbf16, #tpu.memory_space<vmem>>, vector<2x8x128xbf16>,
    return
  }
  func.func @transform_0(%arg0: i32) -> (i32, i32, i32) {
    %c0_i32 = arith.constant 0 : i32
    %c0_i32_0 = arith.constant 0 : i32
    %c0_i32_1 = arith.constant 0 : i32
    return %arg0, %c0_i32, %c0_i32_0 : i32, i32, i32
  }
  func.func @transform_1(%arg0: i32) -> (i32, i32) {
    %c0_i32 = arith.constant 0 : i32
    %c0_i32_0 = arith.constant 0 : i32
    %c0_i32_1 = arith.constant 0 : i32
    return %c0_i32, %c0_i32_0 : i32, i32
  }
  func.func @transform_2(%arg0: i32) -> (i32, i32) {
    %c0_i32 = arith.constant 0 : i32
    %c0_i32_0 = arith.constant 0 : i32
    %c0_i32_1 = arith.constant 0 : i32
    return %c0_i32, %c0_i32_0 : i32, i32
  }
  func.func @transform_3(%arg0: i32) -> (i32, i32) {
    %c0_i32 = arith.constant 0 : i32
    %c0_i32_0 = arith.constant 0 : i32
    %c0_i32_1 = arith.constant 0 : i32
    return %c0_i32, %c0_i32_0 : i32, i32
  }
  func.func @transform_4(%arg0: i32) -> (i32, i32) {
    %c0_i32 = arith.constant 0 : i32
    %c0_i32_0 = arith.constant 0 : i32
    %c0_i32_1 = arith.constant 0 : i32
    return %c0_i32, %c0_i32_0 : i32, i32
  }
  func.func @transform_5(%arg0: i32) -> (i32, i32) {
    %c0_i32 = arith.constant 0 : i32
    %c0_i32_0 = arith.constant 0 : i32
    %c0_i32_1 = arith.constant 0 : i32
    return %c0_i32, %c0_i32_0 : i32, i32
  }
  func.func @transform_6(%arg0: i32) -> (i32, i32) {
    %c0_i32 = arith.constant 0 : i32
    %c0_i32_0 = arith.constant 0 : i32
    %c0_i32_1 = arith.constant 0 : i32
    return %c0_i32, %c0_i32_0 : i32, i32
  }
  func.func @transform_7(%arg0: i32) -> (i32, i32) {
    %c0_i32 = arith.constant 0 : i32
    %c0_i32_0 = arith.constant 0 : i32
    %c0_i32_1 = arith.constant 0 : i32
    return %c0_i32, %c0_i32_0 : i32, i32
  }
  func.func @transform_8(%arg0: i32) -> (i32, i32) {
    %c0_i32 = arith.constant 0 : i32
    %c0_i32_0 = arith.constant 0 : i32
    %c0_i32_1 = arith.constant 0 : i32
    return %c0_i32, %c0_i32_0 : i32, i32
  }
  func.func @transform_9(%arg0: i32) -> (i32, i32, i32) {
    %c0_i32 = arith.constant 0 : i32
    %c0_i32_0 = arith.constant 0 : i32
    %c0_i32_1 = arith.constant 0 : i32
    return %arg0, %c0_i32, %c0_i32_0 : i32, i32, i32
  }
}

</mosaic_0001>

<bundles_post_ra>
// kernel: tpu_custom_call.1
= control target key start
LH: loop header
LB: loop body
LE: loop exit
PB: predicated region body
PF: predicated region fallthrough
CT: control target
= control target key end

     0   :  { %s1867_s0 = inlined_call_operand.hbm [shape: f32[6,8,32], index: 0, kind: input, shape index: {}]   ;;  %s1868_s1 = inlined_call_operand.hbm [shape: bf16[32,96], index: 1, kind: input, shape index: {}]   ;;  %s1869_s2 = inlined_call_operand.vmem [shape: f32[1,96], index: 2, kind: input, shape index: {}]   ;;  %s1870_s3 = inlined_call_operand.hbm [shape: bf16[32,32], index: 3, kind: input, shape index: {}]   ;;  %s1871_s4 = inlined_call_operand.vmem [shape: f32[1,32], index: 4, kind: input, shape index: {}]   ;;  %s1872_s5 = inlined_call_operand.vmem [shape: bf16[32,64], index: 5, kind: input, shape index: {}]   ;;  %s1873_s6 = inlined_call_operand.vmem [shape: f32[1,64], index: 6, kind: input, shape index: {}]   ;;  %s1874_s7 = inlined_call_operand.hbm [shape: bf16[64,128], index: 7, kind: input, shape index: {}]   ;;  %s1875_s8 = inlined_call_operand.vmem [shape: f32[1,128], index: 8, kind: input, shape index: {}]   ;;  %s1876_s9 = inlined_call_operand.hbm [shape: bf16[6,8,128], index: 9, kind: output, shape index: {}]  }
   0x1   :  { %1883 = sst [smem:[#allocation17_spill]] %s1876_s9 }
   0x2   :  { %14 = vsyncpa [#allocation3], 0 }
   0x3   :  { %16 = vsyncpa [#allocation3 + $0x1], 0 }
   0x4   :  { %17 = vsyncpa [#allocation6], 0 }
   0x5   :  { %18 = vsyncpa [#allocation9], 0 }
   0x6   :  { %19 = vsyncpa [#allocation4], 0 }
   0x7   :  { %21 = vsyncpa [#allocation4 + $0x1], 0  ;;  %s1525_s30 = smov 0   ;;  %s1527_s10 = smov 0  }
   0x8   :  { %s1529_s11 = smov 0   ;;  %s1531_s12 = smov 0  }
   0x9 LB: > { %1884 = sst [smem:[#allocation15_spill]] %s1447_s30  ;;  %s1546_s13 = sadd.s32 4294967295, %s1459_s12   ;;  %s1459_s12 = sphi %s1531_s12, %s1907_s12   ;;  %s1455_s11 = sphi %s1529_s11, %s1906_s11   ;;  %s1451_s10 = sphi %s1527_s10, %s1905_s10   ;;  %s1447_s30 = sphi %s1525_s30, %s1904_s30  }
   0xa   : > { %s1036_s14 = sadd.s32 4294967294, %s1459_s12   ;;  %p47_p0 = scmp.ne.s32.totalorder %s1451_s10, %s1447_s30 }
   0xb   : > { %p1877_p1 = scmp.eq.s32.totalorder %s1546_s13, 0  ;;  %p245_p3 = scmp.eq.s32.totalorder %s1036_s14, 2 }
   0xc   : > { %p1037_p5 = scmp.ge.s32.totalorder %s1459_s12, 1  ;;  %p252_p7 = scmp.lt.s32.totalorder %s1459_s12, 4 }
   0xd   : > { %p1555_p4 = por %p1877_p1, %p47_p0  ;;  %p1560_p6 = por %p245_p3, %p47_p0 }
   0xe   : > { %p1565_p8 = pnand %p1037_p5, %p252_p7  ;;  %s1461_s18 = smov [#allocation5]  }
   0xf   : > { %s1885_s15 = scalar_select %p1555_p4, 1, 0 }
  0x10   : > { %s1886_s16 = scalar_select %p1560_p6, 1, 0 }
  0x11   : > { %s1888_s17 = scalar_select %p1565_p8, 1, 0 }
  0x12   : > { %1887 = sst [smem:[#allocation16_spill]] %s1886_s16  ;;  %s264_s19 = sshll.u32 %s1461_s18, 4  ;;  %s1569_s19 = int_to_ptr.vmem [resolvable:$true] %s264_s19 }
  0x13   : > { %p1183_p9 = pneg %p1565_p8  ;;  %s1462_s21 = smov [#allocation7]  }
  0x14   : > { %s280_s22 = sshll.u32 %s1462_s21, 4  ;;  %s1463_s23 = smov [#allocation8]   ;;  %s1579_s22 = int_to_ptr.vmem [resolvable:$true] %s280_s22 }
  0x15   : > { %p1575_p10 = pnand %p1183_p9, %p1877_p1  ;;  %s1581_s24 = sshll.u32 %s1463_s23, 4  ;;  %s303_s24 = int_to_ptr.vmem [resolvable:$true] %s1581_s24 }
  0x16   : > { %s1271_s27 = scalar_lea.hbm %s1868_s1, 256 }
  0x17   : > { %p1272_p11 = scmp.ne.s32.totalorder %s1868_s1, %s1271_s27  ;;  %p1591_p12 = pneg %p1575_p10 }
  0x18   : > { %p1278_p3 = scmp.lt.u32.totalorder %s1271_s27, %s1868_s1 }
  0x19   : > { %p1274_p13 = pnand %p1591_p12, %p1272_p11 }
  0x1b   : > { %p1275_p0 = pneg %p1274_p13 }
  0x1d   : > { %p1280_p5 = pnand %p1278_p3, %p1275_p0 }
  0x1f   : > { %1283 = shalt.err (!%p1280_p5)
}
  0x20   : > { %s1284_s23 = scalar_lea.vmem %s1569_s19, 256  ;;  %p1292_p2 = scmp.lt.s32.totalorder %s1569_s19, %s1569_s19 }
  0x21   : > { %p1285_p7 = scmp.ne.s32.totalorder %s1569_s19, %s1284_s23  ;;  %p1293_p6 = scmp.lt.s32.totalorder %s1284_s23, %s1284_s23 }
  0x23   : > { %p1287_p9 = pnand %p1285_p7, %p1591_p12  ;;  %p1294_p11 = por %p1293_p6, %p1292_p2 }
  0x25   : > { %p1288_p1 = pneg %p1287_p9 }
  0x27   : > { %p1295_p13 = pnand %p1294_p11, %p1288_p1 }
  0x29   : > { %1298 = shalt.err (!%p1295_p13)
}
  0x2a   : > { %s1464_s25 = smov 64   ;;  %s1465_s26 = smov 4  }
  0x2b   : > { %1186 = dma.hbm_to_vmem [thread:$0]  (!%p1575_p10), %s1868_s1, 256, %s1569_s19, [#allocation6], %s1464_s25, %s1464_s25, %s1465_s26  }
  0x2c   : > { %s1299_s21 = scalar_lea.hbm %s1870_s3, 256 }
  0x2d   : > { %p1300_p1 = scmp.ne.s32.totalorder %s1870_s3, %s1299_s21  ;;  %p1306_p0 = scmp.lt.u32.totalorder %s1299_s21, %s1870_s3 }
  0x2f   : > { %p1302_p2 = pnand %p1300_p1, %p1591_p12 }
  0x31   : > { %p1303_p6 = pneg %p1302_p2 }
  0x33   : > { %p1308_p3 = pnand %p1306_p0, %p1303_p6 }
  0x35   : > { %1311 = shalt.err (!%p1308_p3)
}
  0x36   : > { %s1312_s19 = scalar_lea.vmem %s1579_s22, 256  ;;  %p1320_p11 = scmp.lt.s32.totalorder %s1579_s22, %s1579_s22 }
  0x37   : > { %p1313_p5 = scmp.ne.s32.totalorder %s1579_s22, %s1312_s19  ;;  %p1321_p13 = scmp.lt.s32.totalorder %s1312_s19, %s1312_s19 }
  0x39   : > { %p1315_p7 = pnand %p1313_p5, %p1591_p12  ;;  %p1322_p1 = por %p1321_p13, %p1320_p11 }
  0x3b   : > { %p1316_p9 = pneg %p1315_p7 }
  0x3d   : > { %p1323_p2 = pnand %p1322_p1, %p1316_p9 }
  0x3f   : > { %1326 = shalt.err (!%p1323_p2)
}
  0x40   : > { %1189 = dma.hbm_to_vmem [thread:$0]  (!%p1575_p10), %s1870_s3, 256, %s1579_s22, [#allocation6], %s1464_s25, %s1464_s25, %s1465_s26  }
  0x41   : > { %s1327_s28 = scalar_lea.hbm %s1874_s7, 512 }
  0x42   : > { %p1328_p6 = scmp.ne.s32.totalorder %s1874_s7, %s1327_s28  ;;  %p1334_p5 = scmp.lt.u32.totalorder %s1327_s28, %s1874_s7 }
  0x44   : > { %p1330_p0 = pnand %p1328_p6, %p1591_p12 }
  0x46   : > { %p1331_p3 = pneg %p1330_p0 }
  0x48   : > { %p1336_p7 = pnand %p1334_p5, %p1331_p3 }
  0x4a   : > { %1339 = shalt.err (!%p1336_p7)
}
  0x4b   : > { %s1340_s19 = scalar_lea.vmem %s303_s24, 512  ;;  %p1348_p1 = scmp.lt.s32.totalorder %s303_s24, %s303_s24 }
  0x4c   : > { %p1341_p9 = scmp.ne.s32.totalorder %s303_s24, %s1340_s19  ;;  %p1349_p2 = scmp.lt.s32.totalorder %s1340_s19, %s1340_s19 }
  0x4e   : > { %p1343_p11 = pnand %p1341_p9, %p1591_p12  ;;  %p1350_p4 = por %p1349_p2, %p1348_p1 }
  0x50   : > { %p1344_p13 = pneg %p1343_p11 }
  0x52   : > { %p1351_p8 = pnand %p1350_p4, %p1344_p13 }
  0x54   : > { %1354 = shalt.err (!%p1351_p8)
}
  0x55   : > { %1192 = dma.hbm_to_vmem [thread:$0]  (!%p1575_p10), %s1874_s7, 512, %s303_s24, [#allocation9], %s1464_s25, %s1464_s25, %s1465_s26  }
  0x56   : > { %s1664_s14 = sadd.s32 1, %s1459_s12   ;;  %s34_s30 = sadd.s32 1, %s1455_s11 }
  0x57   : > { %s31_s20 = ssub.s32 %s1459_s12, %s1664_s14  ;;  %p41_p8 = scmp.ne.s32.totalorder %s1455_s11, %s1451_s10 }
  0x58   : > { %p32_p4 = scmp.eq.s32.totalorder %s31_s20, 0  ;;  %p42_p12 = scmp.eq.s32.totalorder %s1459_s12, 0 }
  0x59   : > { %p1204_p6 = scmp.lt.s32.totalorder %s1459_s12, 3  ;;  %p1891_p3 = scmp.eq.s32.totalorder %s1546_s13, 2 }
  0x5a   : > { %s1674_s16 = scalar_select %p32_p4, %s1455_s11, %s34_s30  }
  0x5b   : > { %p43_p0 = por %p42_p12, %p41_p8  ;;  %p1678_p5 = por %p1891_p3, %p41_p8 }
  0x5c   : > { %s319_s28 = sand.u32 1, %s1455_s11   ;;  %s1078_s29 = sshll.u32 %s1459_s12, 8 }
  0x5d   : > { %s1042_s24 = sshll.u32 %s319_s28, 4  ;;  %s1687_s18 = scalar_lea.hbm %s1867_s0, %s1078_s29 }
  0x5e   : > { %s323_s21 = scalar_lea.vmem [#allocation2], %s1042_s24  ;;  %p1689_p10 = pnand %p1204_p6, %p43_p0 }
  0x5f   : > { %s330_s23 = sshll.u32 %s323_s21, 4  ;;  %s1695_s22 = scalar_lea.sflag [#allocation3], %s319_s28  ;;  %s1693_s23 = int_to_ptr.vmem [resolvable:$true] %s330_s23 }
  0x60   : > { %s1355_s9 = scalar_lea.hbm %s1687_s18, 256  ;;  %p1357_p9 = pneg %p1689_p10 }
  0x61   : > { %p1356_p7 = scmp.ne.s32.totalorder %s1687_s18, %s1355_s9  ;;  %s1360_s29 = scalar_lea.hbm %s1867_s0, 768 }
  0x62   : > { %p1361_p1 = scmp.lt.u32.totalorder %s1687_s18, %s1867_s0  ;;  %p1362_p2 = scmp.lt.u32.totalorder %s1360_s29, %s1355_s9 }
  0x63   : > { %p1358_p11 = pnand %p1357_p9, %p1356_p7  ;;  %p1364_p8 = scmp.lt.u32.totalorder %s1355_s9, %s1687_s18 }
  0x64   : > { %p1363_p4 = por %p1362_p2, %p1361_p1 }
  0x65   : > { %p1359_p13 = pneg %p1358_p11 }
  0x66   : > { %p1365_p12 = por %p1364_p8, %p1363_p4 }
  0x68   : > { %p1366_p6 = pnand %p1365_p12, %p1359_p13 }
  0x6a   : > { %1369 = shalt.err (!%p1366_p6)
}
  0x6b   : > { %s1370_s28 = scalar_lea.vmem %s1693_s23, 256  ;;  %s1466_s26 = smov [#allocation2]  }
  0x6c   : > { %p1371_p0 = scmp.ne.s32.totalorder %s1693_s23, %s1370_s28  ;;  %s1375_s21 = sshll.u32 %s1466_s26, 4  ;;  %s1376_s21 = int_to_ptr.vmem [resolvable:$false] %s1375_s21 }
  0x6d   : > { %s1377_s20 = scalar_lea.vmem %s1376_s21, 512  ;;  %p1378_p11 = scmp.lt.s32.totalorder %s1693_s23, %s1376_s21 }
  0x6e   : > { %p1373_p3 = pnand %p1371_p0, %p1357_p9  ;;  %p1379_p1 = scmp.lt.s32.totalorder %s1377_s20, %s1370_s28 }
  0x70   : > { %p1374_p7 = pneg %p1373_p3  ;;  %p1380_p2 = por %p1379_p1, %p1378_p11 }
  0x72   : > { %p1381_p4 = pnand %p1380_p2, %p1374_p7 }
  0x74   : > { %1384 = shalt.err (!%p1381_p4)
}
  0x75   : > { %s1467_s9 = smov 128   ;;  %s1468_s30 = smov 8  }
  0x76   : > { %1196 = dma.hbm_to_vmem [thread:$0]  (!%p1689_p10), %s1687_s18, 256, %s1693_s23, %s1695_s22, %s1467_s9, %s1467_s9, %s1468_s30  }
  0x77   : > { %p1894_p9 = scmp.ne.s32.totalorder %s1888_s17, 0 }
  0x78   : > { %s1726_s29 = sand.u32 (!%p1894_p9), 1, %s1451_s10   ;;  %p1895_p13 = scmp.ne.s32.totalorder (!%p1894_p9), %s1885_s15, 0 }
  0x79   : > { %342 = sbr.rel (%p1894_p9) target bundleno = 1903 (0x76f), region = 56  ;;  %s1046_s24 = sshll.u32 (!%p1894_p9), %s1726_s29, 4 }
  0x7a   : > { %s345_s25 = scalar_lea.sflag (!%p1894_p9), [#allocation3], %s1726_s29  ;;  %s348_s28 = scalar_lea.vmem (!%p1894_p9), [#allocation2], %s1046_s24 }
  0x80   : > { %1430 = dma.done.wait (%p1895_p13), %s345_s25, 256  }
  0x81   : > { %1432 = vsyncadd (%p1895_p13), %s345_s25, 4294967040  ;;  %p1896_p8 = scmp.eq.s32.totalorder %s1546_s13, 0 }
  0x83   : > { %1434 = dma.done.wait (%p1896_p8), [#allocation6], 512   ;;  %p1897_p10 = pmov %p1896_p8 }
  0x84   : > { %p1898_p12 = pmov %p1896_p8 }
  0x85   : > { %1436 = vsyncadd (%p1897_p10), [#allocation6], 4294966784 }
  0x86   : > { %1438 = dma.done.wait (%p1898_p12), [#allocation9], 512   ;;  %p1899_p6 = pmov %p1896_p8 }
  0x87   : > { %v1469_v0 = vmov 0.0   ;;  %vm1470_vm0 = vmmov 0   ;;  %v1253_v1 = vld [vmem:[#allocation5] sm:$0xff]   ;;  %v1254_v2 = vld [vmem:[#allocation5 + $0x8] sm:$0xff]   ;;  %vm424_vm1 = vcmask 261120   ;;  %s1471_s18 = smov 96  }
  0x88   : > { %1440 = vsyncadd (%p1899_p6), [#allocation9], 4294966784  ;;  %1107 = vmatprep.subr.bf16.mxu0 %v1469_v0  ;;  %1111 = vmatprep.mubr.msk.bf16.mxu0 %vm1470_vm0, %v1469_v0  ;;  %v1748_v3 = vld [vmem:[%s348_s28] sm:$0xff]  ;;  %v1750_v4 = vld [vmem:[%s348_s28 + $0x8] sm:$0xff]  ;;  %vm569_vm2 = vcmask 64512   ;;  %s1472_s23 = smov 64  }
  0x89   : > { %1115 = vmatprep.subr.bf16.mxu1 %v1469_v0  ;;  %1117 = vmatprep.mubr.msk.bf16.mxu1 %vm1470_vm0, %v1469_v0  ;;  %v400_v5 = vpack.c.bf16 %v1750_v4, %v1748_v3  ;;  %v1051_v6 = vld [vmem:[%s1869_s2] ss:$0 sm:$0xff]  ;;  %vm599_vm3 = vcmask 1043456   ;;  %v1255_v51 = vld [vmem:[#allocation7] sm:$0xff]   ;;  %v1256_v52 = vld [vmem:[#allocation7 + $0x8] sm:$0xff]   ;;  %vm871_vm4 = vcmask 523264  }
  0x8a   : > { %1108 = vmatpush3.bf16.msra.mxu0 %v1253_v1  ;;  %v1257_v62 = vld [vmem:[%s1872_s5] sm:$0xff]   ;;  %v1258_v63 = vld [vmem:[%s1872_s5 + $0x8] sm:$0xff]   ;;  %s1050_s25 = sshll.u32 %s1726_s29, 3  ;;  %s1079_s19 = sshll.u32 %s1546_s13, 7 }
  0x8b   : > { %1109 = vmatprep.subr.bf16.mxu0 %v1469_v0  ;;  %v1259_v1 = vld [vmem:[#allocation8] sm:$0xff]   ;;  %s394_s17 = scalar_lea.vmem [#allocation10], %s1050_s25  ;;  %s1900_s21 = sld [smem:[#allocation17_spill]] }
  0x8c   : > { %s921_s9 = scalar_lea.sflag [#allocation4], %s1726_s29  ;;  %s1473_s13 = smov [#allocation10]  }
  0x8d   : > { %s1389_s24 = sshll.u32 %s1473_s13, 4  ;;  %s1390_s24 = int_to_ptr.vmem [resolvable:$false] %s1389_s24 }
  0x8e   : > { %1110 = vmatpush3.bf16.msra.mxu0 %v1254_v2  ;;  %v1260_v2 = vld [vmem:[#allocation8 + $0x8] sm:$0xff]   ;;  %s1391_s25 = scalar_lea.vmem %s1390_s24, 256 }
  0x8f   : > { %1121 = vmatprep.subr.bf16.mxu0 %v1469_v0 }
  0x91   : > { %1112 = vmatmul.mubr.msk.bf16.vlgmr.msra.gmra.mrb[0].mxu0 %vm424_vm1, %v400_v5  ;;  %v1059_v5 = vld [vmem:[%s1871_s4] ss:$0 sm:$0xff]  ;;  %s1822_s20 = scalar_lea.hbm %s1900_s21, %s1079_s19 }
  0x92   : > { %1123 = vmatprep.mubr.msk.bf16.mxu0 %vm1470_vm0, %v1469_v0 }
 0x164   : > { %v462_v7 = vpop.f32.mrb[0].mxu0 }
 0x165   : > { %v463_v8 = vadd.f32 %v1051_v6, %v462_v7  ;;  %v1113_v9 = vpop.f32.mrb[1].mxu0 }
 0x166   : > { %v465_v10 = vpop.f32.mrb[2].mxu0 }
 0x167   : > { %v469_v11 = vpack.c.bf16 %v463_v8, %v463_v8  ;;  %v466_v12 = vadd.f32 %v1051_v6, %v465_v10  ;;  %v1114_v13 = vpop.f32.mrb[3].mxu0 }
 0x169   : > { %472 = vrot.lane.b32.xlu0 %v469_v11, %s1471_s18  ;;  %v470_v14 = vpack.c.bf16 %v466_v12, %v466_v12 }
 0x16d   : > { %521 = vrot.lane.b32.xlu0 %v470_v14, %s1471_s18  ;;  %s934_s18 = sshll.u32 %s394_s17, 4  ;;  %s1817_s18 = int_to_ptr.vmem [resolvable:$true] %s934_s18 }
 0x16e   : > { %s1385_s30 = scalar_lea.vmem %s1817_s18, 128  ;;  %p1392_p11 = scmp.lt.s32.totalorder %s1817_s18, %s1390_s24 }
 0x16f   : > { %p1386_p0 = scmp.ne.s32.totalorder %s1817_s18, %s1385_s30  ;;  %p1393_p1 = scmp.lt.s32.totalorder %s1391_s25, %s1385_s30 }
 0x171   : > { %p1387_p3 = pnand %p1386_p0, %p1678_p5  ;;  %p1394_p2 = por %p1393_p1, %p1392_p11 }
 0x173   : > { %p1388_p7 = pneg %p1387_p3 }
 0x175   : > { %p1395_p4 = pnand %p1394_p2, %p1388_p7 }
 0x1db   : > { %v473_v15 = vpop.permute.xlu0 %472 }
 0x1dc   : > { %v478_v16 = vsel %vm424_vm1, %v473_v15, 0  ;;  %v1261_v15 = vld [vmem:[#allocation8 + $0x10] sm:$0xff]  }
 0x1dd   : > { %1116 = vmatpush3.bf16.xpose.msra.mxu1 %v478_v16  ;;  %v1262_v16 = vld [vmem:[#allocation8 + $0x18] sm:$0xff]  }
 0x1de   : > { %1127 = vmatprep.subr.bf16.mxu1 %v1469_v0 }
 0x1df   : > { %v522_v17 = vpop.permute.xlu0 %521 }
 0x1e0   : > { %v527_v18 = vsel %vm424_vm1, %v522_v17, 0  ;;  %v1063_v17 = vld [vmem:[%s1873_s6] ss:$0 sm:$0xff] }
 0x1e1   : > { %1122 = vmatpush3.bf16.xpose.msra.mxu0 %v527_v18 }
 0x1e2   : > { %1133 = vmatprep.subr.bf16.mxu0 %v1469_v0 }
 0x1e4   : > { %1118 = vmatmul.mubr.msk.bf16.vlgmr.msra.gmra.mrb[0].mxu1 %vm424_vm1, %v469_v11 }
 0x1e5   : > { %1129 = vmatprep.mubr.msk.bf16.mxu1 %vm1470_vm0, %v1469_v0 }
 0x1e8   : > { %1124 = vmatmul.mubr.msk.bf16.vlgmr.msra.gmra.mrb[4].mxu0 %vm424_vm1, %v470_v14 }
 0x1e9   : > { %1135 = vmatprep.mubr.msk.bf16.mxu0 %vm1470_vm0, %v1469_v0 }
 0x2b7   : > { %v514_v19 = vpop.f32.mrb[0].mxu1 }
 0x2b8   : > { %v1119_v20 = vpop.f32.mrb[1].mxu1  ;;  %v570_v21 = vsel %vm569_vm2, %v514_v19, -inf }
 0x2b9   : > { %571 = vmax.xlane.f32.xlu1 %v570_v21  ;;  %v517_v22 = vpop.f32.mrb[2].mxu1 }
 0x2ba   : > { %v1120_v23 = vpop.f32.mrb[3].mxu1 }
 0x2bb   : > { %v563_v24 = vpop.f32.mrb[4].mxu0 }
 0x2bc   : > { %v1125_v25 = vpop.f32.mrb[5].mxu0  ;;  %v573_v26 = vsel %vm569_vm2, %v563_v24, -inf }
 0x2bd   : > { %574 = vmax.xlane.f32.xlu1 %v573_v26  ;;  %v566_v27 = vpop.f32.mrb[6].mxu0 }
 0x2be   : > { %v1126_v28 = vpop.f32.mrb[7].mxu0 }
 0x2ce   : > { %594 = vrot.lane.b32.xlu1 %v469_v11, %s1472_s23 }
 0x346   : > { %v572_v29 = vpop.xlane.xlu1 %571 }
 0x347   : > { %v576_v30 = vsub.f32 %v514_v19, %v572_v29 }
 0x349   : > { %v578_v31 = vmul.f32 1.442695, %v576_v30 }
 0x34a   : > { %v575_v32 = vpop.xlane.xlu1 %574 }
 0x34b   : > { %1263 = vpow2.f32 %v578_v31  ;;  %v577_v33 = vsub.f32 %v563_v24, %v575_v32 }
 0x34d   : > { %v580_v34 = vmul.f32 1.442695, %v577_v33 }
 0x34e   : > { %v595_v35 = vpop.permute.xlu1 %594 }
 0x34f   : > { %1265 = vpow2.f32 %v580_v34  ;;  %v601_v36 = vsel %vm599_vm3, %v595_v35, 0 }
 0x350   : > { %1128 = vmatpush3.bf16.msra.mxu1 %v601_v36 }
 0x351   : > { %1139 = vmatprep.subr.bf16.mxu1 %v1469_v0 }
 0x355   : > { %v1264_v37 = vpop.eup %1263 }
 0x356   : > { %v582_v38 = vsel %vm569_vm2, %v1264_v37, 0.0 }
 0x357   : > { %583 = vadd.xlane.f32.xlu0 %v582_v38 }
 0x359   : > { %v1266_v39 = vpop.eup %1265 }
 0x35a   : > { %v585_v40 = vsel %vm569_vm2, %v1266_v39, 0.0 }
 0x35b   : > { %586 = vadd.xlane.f32.xlu1 %v585_v40 }
 0x36c   : > { %643 = vrot.lane.b32.xlu1 %v470_v14, %s1472_s23 }
 0x3e4   : > { %v584_v41 = vpop.xlane.xlu0 %583 }
 0x3e5   : > { %1267 = vrcp.f32 %v584_v41 }
 0x3e8   : > { %v587_v42 = vpop.xlane.xlu1 %586 }
 0x3e9   : > { %1269 = vrcp.f32 %v587_v42 }
 0x3ec   : > { %v644_v43 = vpop.permute.xlu1 %643 }
 0x3ed   : > { %v649_v44 = vsel %vm599_vm3, %v644_v43, 0 }
 0x3ee   : > { %1134 = vmatpush3.bf16.msra.mxu0 %v649_v44 }
 0x3ef   : > { %v1268_v45 = vpop.eup %1267  ;;  %1147 = vmatprep.subr.bf16.mxu0 %v1469_v0 }
 0x3f0   : > { %v590_v46 = vmul.f32 %v1268_v45, %v1264_v37 }
 0x3f2   : > { %v592_v47 = vpack.c.bf16 %v590_v46, %v590_v46 }
 0x3f3   : > { %v1270_v48 = vpop.eup %1269 }
 0x3f4   : > { %v591_v49 = vmul.f32 %v1270_v48, %v1266_v39  ;;  %1130 = vmatmul.mubr.msk.bf16.vlgmr.msra.gmra.mrb[4].mxu1 %vm569_vm2, %v592_v47 }
 0x3f5   : > { %1143 = vmatprep.mubr.msk.bf16.mxu1 %vm1470_vm0, %v1469_v0  ;;  %1140 = vmatpush3.bf16.msra.mxu1 %v1255_v51 }
 0x3f6   : > { %v593_v50 = vpack.c.bf16 %v591_v49, %v591_v49  ;;  %1141 = vmatprep.subr.bf16.mxu1 %v1469_v0 }
 0x3f8   : > { %1136 = vmatmul.mubr.msk.bf16.vlgmr.msra.gmra.mrb[8].mxu0 %vm569_vm2, %v593_v50 }
 0x3f9   : > { %1151 = vmatprep.mubr.msk.bf16.mxu0 %vm1470_vm0, %v1469_v0  ;;  %1142 = vmatpush3.bf16.msra.mxu1 %v1256_v52 }
 0x3fa   : > { %1155 = vmatprep.subr.bf16.mxu1 %v1469_v0  ;;  %1148 = vmatpush3.bf16.msra.mxu0 %v1257_v62 }
 0x3fb   : > { %1149 = vmatprep.subr.bf16.mxu0 %v1469_v0 }
 0x3fe   : > { %1150 = vmatpush3.bf16.msra.mxu0 %v1258_v63 }
 0x4c7   : > { %v637_v53 = vpop.f32.mrb[4].mxu1 }
 0x4c8   : > { %v1131_v54 = vpop.f32.mrb[5].mxu1 }
 0x4c9   : > { %v640_v55 = vpop.f32.mrb[6].mxu1 }
 0x4ca   : > { %v1132_v56 = vpop.f32.mrb[7].mxu1 }
 0x4cb   : > { %v685_v57 = vpop.f32.mrb[8].mxu0 }
 0x4cc   : > { %v691_v58 = vpack.c.bf16 %v685_v57, %v637_v53  ;;  %v1137_v59 = vpop.f32.mrb[9].mxu0 }
 0x4cd   : > { %v688_v60 = vpop.f32.mrb[10].mxu0 }
 0x4ce   : > { %v1138_v61 = vpop.f32.mrb[11].mxu0  ;;  %1144 = vmatmul.mubr.msk.bf16.vlgmr.msra.gmra.mrb[8].mxu1 %vm424_vm1, %v691_v58 }
 0x4cf   : > { %1163 = vmatprep.mubr.msk.bf16.mxu1 %vm1470_vm0, %v1469_v0  ;;  %1156 = vmatpush3.bf16.msra.mxu1 %v1259_v1 }
 0x4d0   : > { %1157 = vmatprep.subr.bf16.mxu1 %v1469_v0 }
 0x4d3   : > { %1158 = vmatpush3.bf16.msra.mxu1 %v1260_v2 }
 0x4d4   : > { %1159 = vmatprep.subr.bf16.mxu1 %v1469_v0 }
 0x4d7   : > { %1160 = vmatpush3.bf16.msra.mxu1 %v1261_v15 }
 0x4d8   : > { %1161 = vmatprep.subr.bf16.mxu1 %v1469_v0  ;;  %v1067_v0 = vld [vmem:[%s1875_s8] ss:$0 sm:$0xff] }
 0x4db   : > { %1162 = vmatpush3.bf16.msra.mxu1 %v1262_v16 }
 0x5a1   : > { %v752_v6 = vpop.f32.mrb[8].mxu1 }
 0x5a2   : > { %v753_v7 = vadd.f32 %v1059_v5, %v752_v6  ;;  %v1145_v8 = vpop.f32.mrb[9].mxu1 }
 0x5a3   : > { %v755_v9 = vpop.f32.mrb[10].mxu1 }
 0x5a4   : > { %v756_v10 = vadd.f32 %v1059_v5, %v755_v9  ;;  %v1146_v11 = vpop.f32.mrb[11].mxu1  ;;  %v759_v12 = vadd.f32 %v753_v7, %v1748_v3 }
 0x5a6   : > { %v760_v13 = vadd.f32 %v756_v10, %v1750_v4 }
 0x5a8   : > { %v761_v14 = vpack.c.bf16 %v760_v13, %v759_v12 }
 0x5aa   : > { %1152 = vmatmul.mubr.msk.bf16.vlgmr.msra.gmra.mrb[12].mxu0 %vm424_vm1, %v761_v14 }
 0x67d   : > { %v822_v18 = vpop.f32.mrb[12].mxu0 }
 0x67e   : > { %v823_v19 = vadd.f32 %v1063_v17, %v822_v18  ;;  %v1153_v20 = vpop.f32.mrb[13].mxu0 }
 0x67f   : > { %v825_v3 = vpop.f32.mrb[14].mxu0 }
 0x680   : > { %v826_v4 = vadd.f32 %v1063_v17, %v825_v3  ;;  %v1154_v21 = vpop.f32.mrb[15].mxu0  ;;  %v829_v22 = vmax.f32 %v823_v19, 0.0 }
 0x682   : > { %v830_v23 = vmax.f32 %v826_v4, 0.0 }
 0x684   : > { %v831_v24 = vpack.c.bf16 %v830_v23, %v829_v22 }
 0x686   : > { %1164 = vmatmul.mubr.msk.bf16.vlgmr.msra.gmra.mrb[12].mxu1 %vm871_vm4, %v831_v24 }
 0x759   : > { %v909_v25 = vpop.f32.mrb[12].mxu1 }
 0x75a   : > { %v1165_v26 = vpop.f32.mrb[13].mxu1  ;;  %v910_v28 = vadd.f32 %v1067_v0, %v909_v25 }
 0x75b   : > { %v912_v27 = vpop.f32.mrb[14].mxu1 }
 0x75c   : > { %v913_v29 = vadd.f32 %v1067_v0, %v912_v27  ;;  %v1166_v30 = vpop.f32.mrb[15].mxu1 }
 0x75e   : > { %v1083_v31 = vpack.c.bf16 %v913_v29, %v910_v28 }
 0x760   : > { %1084 = vst [vmem:[%s394_s17] sm:$0xff] %v1083_v31  }
 0x761   : > { %1398 = shalt.err (!%p1395_p4)
}
 0x762   : > { %s1399_s28 = scalar_lea.hbm %s1822_s20, 128  ;;  %s1403_s19 = scalar_lea.hbm %s1900_s21, 384 }
 0x763   : > { %p1400_p9 = scmp.ne.s32.totalorder %s1822_s20, %s1399_s28  ;;  %p1404_p10 = scmp.lt.u32.totalorder %s1822_s20, %s1900_s21 }
 0x764   : > { %p1405_p12 = scmp.lt.u32.totalorder %s1403_s19, %s1399_s28  ;;  %p1407_p0 = scmp.lt.u32.totalorder %s1399_s28, %s1822_s20 }
 0x765   : > { %p1401_p13 = pnand %p1400_p9, %p1678_p5 }
 0x766   : > { %p1406_p6 = por %p1405_p12, %p1404_p10 }
 0x767   : > { %p1402_p8 = pneg %p1401_p13 }
 0x768   : > { %p1408_p3 = por %p1407_p0, %p1406_p6 }
 0x76a   : > { %p1409_p7 = pnand %p1408_p3, %p1402_p8 }
 0x76c   : > { %1412 = shalt.err (!%p1409_p7)
}
 0x76d   : > { %s1474_s30 = smov 4  }
 0x76e   : > { %1181 = dma.vmem_to_hbm [thread:$0]  (%p1678_p5), %s1817_s18, 128, %s1822_s20, %s921_s9, %s1472_s23, %s1472_s23, %s1474_s30  }
 0x76f PF: > { %s1901_s13 = sld [smem:[#allocation15_spill]]  ;;  %s1902_s24 = sld [smem:[#allocation16_spill]] }
 0x770   : > { %p1208_p11 = scmp.ge.s32.totalorder %s1459_s12, 2 }
 0x775   : > { %s949_s25 = sand.u32 1, %s1901_s13   ;;  %p1903_p1 = scmp.ne.s32.totalorder %s1902_s24, 0 }
 0x776   : > { %s950_s28 = scalar_lea.sflag [#allocation4], %s949_s25 }
 0x777   : > { %p1198_p2 = pnand %p1208_p11, %p1903_p1 }
 0x779   : > { %1442 = dma.done.wait (!%p1198_p2), %s950_s28, 128  }
 0x77a   : > { %1444 = vsyncadd (!%p1198_p2), %s950_s28, 4294967168  ;;  %p24_p4 = scmp.ge.s32.totalorder %s1664_s14, 5   ;;  %s1904_s30 = smov %s1451_s10 }
 0x77b   : > { %s1905_s10 = smov %s1455_s11  ;;  %s1906_s11 = smov %s1674_s16 }
 0x77c   : > { %s1907_s12 = smov %s1664_s14  ;;  %26 = sbr.rel (!%p24_p4) target bundleno = 9 (0x9), region = 113 }
 0x783   :  { %955 = vsyncpa [#allocation3], 1 }
 0x784   :  { %957 = vsyncpa [#allocation3 + $0x1], 1 }
 0x785   :  { %958 = vsyncpa [#allocation6], 1 }
 0x786   :  { %959 = vsyncpa [#allocation9], 1 }
 0x787   :  { %960 = vsyncpa [#allocation4], 1 }
 0x788   :  { %962 = vsyncpa [#allocation4 + $0x1], 1 }

// kernel: tpu_custom_call.1
= control target key start
LH: loop header
LB: loop body
LE: loop exit
PB: predicated region body
PF: predicated region fallthrough
CT: control target
= control target key end

     0   :  { %s1867_s0 = inlined_call_operand.hbm [shape: f32[6,8,32], index: 0, kind: input, shape index: {}]   ;;  %s1868_s1 = inlined_call_operand.hbm [shape: bf16[32,96], index: 1, kind: input, shape index: {}]   ;;  %s1869_s2 = inlined_call_operand.vmem [shape: f32[1,96], index: 2, kind: input, shape index: {}]   ;;  %s1870_s3 = inlined_call_operand.hbm [shape: bf16[32,32], index: 3, kind: input, shape index: {}]   ;;  %s1871_s4 = inlined_call_operand.vmem [shape: f32[1,32], index: 4, kind: input, shape index: {}]   ;;  %s1872_s5 = inlined_call_operand.vmem [shape: bf16[32,64], index: 5, kind: input, shape index: {}]   ;;  %s1873_s6 = inlined_call_operand.vmem [shape: f32[1,64], index: 6, kind: input, shape index: {}]   ;;  %s1874_s7 = inlined_call_operand.hbm [shape: bf16[64,128], index: 7, kind: input, shape index: {}]   ;;  %s1875_s8 = inlined_call_operand.vmem [shape: f32[1,128], index: 8, kind: input, shape index: {}]   ;;  %s1876_s9 = inlined_call_operand.hbm [shape: bf16[6,8,128], index: 9, kind: output, shape index: {}]  }
   0x1   :  { %1883 = sst [smem:[#allocation17_spill]] %s1876_s9 }
   0x2   :  { %14 = vsyncpa [#allocation3], 0 }
   0x3   :  { %16 = vsyncpa [#allocation3 + $0x1], 0 }
   0x4   :  { %17 = vsyncpa [#allocation6], 0 }
   0x5   :  { %18 = vsyncpa [#allocation9], 0 }
   0x6   :  { %19 = vsyncpa [#allocation4], 0 }
   0x7   :  { %21 = vsyncpa [#allocation4 + $0x1], 0  ;;  %s1525_s30 = smov 0   ;;  %s1527_s10 = smov 0  }
   0x8   :  { %s1529_s11 = smov 0   ;;  %s1531_s12 = smov 0  }
   0x9 LB: > { %1884 = sst [smem:[#allocation15_spill]] %s1447_s30  ;;  %s1546_s13 = sadd.s32 4294967295, %s1459_s12   ;;  %s1459_s12 = sphi %s1531_s12, %s1907_s12   ;;  %s1455_s11 = sphi %s1529_s11, %s1906_s11   ;;  %s1451_s10 = sphi %s1527_s10, %s1905_s10   ;;  %s1447_s30 = sphi %s1525_s30, %s1904_s30  }
   0xa   : > { %s1036_s14 = sadd.s32 4294967294, %s1459_s12   ;;  %p47_p0 = scmp.ne.s32.totalorder %s1451_s10, %s1447_s30 }
   0xb   : > { %p1877_p1 = scmp.eq.s32.totalorder %s1546_s13, 0  ;;  %p245_p3 = scmp.eq.s32.totalorder %s1036_s14, 2 }
   0xc   : > { %p1037_p5 = scmp.ge.s32.totalorder %s1459_s12, 1  ;;  %p252_p7 = scmp.lt.s32.totalorder %s1459_s12, 4 }
   0xd   : > { %p1555_p4 = por %p1877_p1, %p47_p0  ;;  %p1560_p6 = por %p245_p3, %p47_p0 }
   0xe   : > { %p1565_p8 = pnand %p1037_p5, %p252_p7  ;;  %s1461_s18 = smov [#allocation5]  }
   0xf   : > { %s1885_s15 = scalar_select %p1555_p4, 1, 0 }
  0x10   : > { %s1886_s16 = scalar_select %p1560_p6, 1, 0 }
  0x11   : > { %s1888_s17 = scalar_select %p1565_p8, 1, 0 }
  0x12   : > { %1887 = sst [smem:[#allocation16_spill]] %s1886_s16  ;;  %s264_s19 = sshll.u32 %s1461_s18, 4  ;;  %s1569_s19 = int_to_ptr.vmem [resolvable:$true] %s264_s19 }
  0x13   : > { %p1183_p9 = pneg %p1565_p8  ;;  %s1462_s21 = smov [#allocation7]  }
  0x14   : > { %s280_s22 = sshll.u32 %s1462_s21, 4  ;;  %s1463_s23 = smov [#allocation8]   ;;  %s1579_s22 = int_to_ptr.vmem [resolvable:$true] %s280_s22 }
  0x15   : > { %p1575_p10 = pnand %p1183_p9, %p1877_p1  ;;  %s1581_s24 = sshll.u32 %s1463_s23, 4  ;;  %s303_s24 = int_to_ptr.vmem [resolvable:$true] %s1581_s24 }
  0x16   : > { %s1271_s27 = scalar_lea.hbm %s1868_s1, 256 }
  0x17   : > { %p1272_p11 = scmp.ne.s32.totalorder %s1868_s1, %s1271_s27  ;;  %p1591_p12 = pneg %p1575_p10 }
  0x18   : > { %p1278_p3 = scmp.lt.u32.totalorder %s1271_s27, %s1868_s1 }
  0x19   : > { %p1274_p13 = pnand %p1591_p12, %p1272_p11 }
  0x1b   : > { %p1275_p0 = pneg %p1274_p13 }
  0x1d   : > { %p1280_p5 = pnand %p1278_p3, %p1275_p0 }
  0x1f   : > { %1283 = shalt.err (!%p1280_p5)
}
  0x20   : > { %s1284_s23 = scalar_lea.vmem %s1569_s19, 256  ;;  %p1292_p2 = scmp.lt.s32.totalorder %s1569_s19, %s1569_s19 }
  0x21   : > { %p1285_p7 = scmp.ne.s32.totalorder %s1569_s19, %s1284_s23  ;;  %p1293_p6 = scmp.lt.s32.totalorder %s1284_s23, %s1284_s23 }
  0x23   : > { %p1287_p9 = pnand %p1285_p7, %p1591_p12  ;;  %p1294_p11 = por %p1293_p6, %p1292_p2 }
  0x25   : > { %p1288_p1 = pneg %p1287_p9 }
  0x27   : > { %p1295_p13 = pnand %p1294_p11, %p1288_p1 }
  0x29   : > { %1298 = shalt.err (!%p1295_p13)
}
  0x2a   : > { %s1464_s25 = smov 64   ;;  %s1465_s26 = smov 4  }
  0x2b   : > { %1186 = dma.hbm_to_vmem [thread:$0]  (!%p1575_p10), %s1868_s1, 256, %s1569_s19, [#allocation6], %s1464_s25, %s1464_s25, %s1465_s26  }
  0x2c   : > { %s1299_s21 = scalar_lea.hbm %s1870_s3, 256 }
  0x2d   : > { %p1300_p1 = scmp.ne.s32.totalorder %s1870_s3, %s1299_s21  ;;  %p1306_p0 = scmp.lt.u32.totalorder %s1299_s21, %s1870_s3 }
  0x2f   : > { %p1302_p2 = pnand %p1300_p1, %p1591_p12 }
  0x31   : > { %p1303_p6 = pneg %p1302_p2 }
  0x33   : > { %p1308_p3 = pnand %p1306_p0, %p1303_p6 }
  0x35   : > { %1311 = shalt.err (!%p1308_p3)
}
  0x36   : > { %s1312_s19 = scalar_lea.vmem %s1579_s22, 256  ;;  %p1320_p11 = scmp.lt.s32.totalorder %s1579_s22, %s1579_s22 }
  0x37   : > { %p1313_p5 = scmp.ne.s32.totalorder %s1579_s22, %s1312_s19  ;;  %p1321_p13 = scmp.lt.s32.totalorder %s1312_s19, %s1312_s19 }
  0x39   : > { %p1315_p7 = pnand %p1313_p5, %p1591_p12  ;;  %p1322_p1 = por %p1321_p13, %p1320_p11 }
  0x3b   : > { %p1316_p9 = pneg %p1315_p7 }
  0x3d   : > { %p1323_p2 = pnand %p1322_p1, %p1316_p9 }
  0x3f   : > { %1326 = shalt.err (!%p1323_p2)
}
  0x40   : > { %1189 = dma.hbm_to_vmem [thread:$0]  (!%p1575_p10), %s1870_s3, 256, %s1579_s22, [#allocation6], %s1464_s25, %s1464_s25, %s1465_s26  }
  0x41   : > { %s1327_s28 = scalar_lea.hbm %s1874_s7, 512 }
  0x42   : > { %p1328_p6 = scmp.ne.s32.totalorder %s1874_s7, %s1327_s28  ;;  %p1334_p5 = scmp.lt.u32.totalorder %s1327_s28, %s1874_s7 }
  0x44   : > { %p1330_p0 = pnand %p1328_p6, %p1591_p12 }
  0x46   : > { %p1331_p3 = pneg %p1330_p0 }
  0x48   : > { %p1336_p7 = pnand %p1334_p5, %p1331_p3 }
  0x4a   : > { %1339 = shalt.err (!%p1336_p7)
}
  0x4b   : > { %s1340_s19 = scalar_lea.vmem %s303_s24, 512  ;;  %p1348_p1 = scmp.lt.s32.totalorder %s303_s24, %s303_s24 }
  0x4c   : > { %p1341_p9 = scmp.ne.s32.totalorder %s303_s24, %s1340_s19  ;;  %p1349_p2 = scmp.lt.s32.totalorder %s1340_s19, %s1340_s19 }
  0x4e   : > { %p1343_p11 = pnand %p1341_p9, %p1591_p12  ;;  %p1350_p4 = por %p1349_p2, %p1348_p1 }
  0x50   : > { %p1344_p13 = pneg %p1343_p11 }
  0x52   : > { %p1351_p8 = pnand %p1350_p4, %p1344_p13 }
  0x54   : > { %1354 = shalt.err (!%p1351_p8)
}
  0x55   : > { %1192 = dma.hbm_to_vmem [thread:$0]  (!%p1575_p10), %s1874_s7, 512, %s303_s24, [#allocation9], %s1464_s25, %s1464_s25, %s1465_s26  }
  0x56   : > { %s1664_s14 = sadd.s32 1, %s1459_s12   ;;  %s34_s30 = sadd.s32 1, %s1455_s11 }
  0x57   : > { %s31_s20 = ssub.s32 %s1459_s12, %s1664_s14  ;;  %p41_p8 = scmp.ne.s32.totalorder %s1455_s11, %s1451_s10 }
  0x58   : > { %p32_p4 = scmp.eq.s32.totalorder %s31_s20, 0  ;;  %p42_p12 = scmp.eq.s32.totalorder %s1459_s12, 0 }
  0x59   : > { %p1204_p6 = scmp.lt.s32.totalorder %s1459_s12, 3  ;;  %p1891_p3 = scmp.eq.s32.totalorder %s1546_s13, 2 }
  0x5a   : > { %s1674_s16 = scalar_select %p32_p4, %s1455_s11, %s34_s30  }
  0x5b   : > { %p43_p0 = por %p42_p12, %p41_p8  ;;  %p1678_p5 = por %p1891_p3, %p41_p8 }
  0x5c   : > { %s319_s28 = sand.u32 1, %s1455_s11   ;;  %s1078_s29 = sshll.u32 %s1459_s12, 8 }
  0x5d   : > { %s1042_s24 = sshll.u32 %s319_s28, 4  ;;  %s1687_s18 = scalar_lea.hbm %s1867_s0, %s1078_s29 }
  0x5e   : > { %s323_s21 = scalar_lea.vmem [#allocation2], %s1042_s24  ;;  %p1689_p10 = pnand %p1204_p6, %p43_p0 }
  0x5f   : > { %s330_s23 = sshll.u32 %s323_s21, 4  ;;  %s1695_s22 = scalar_lea.sflag [#allocation3], %s319_s28  ;;  %s1693_s23 = int_to_ptr.vmem [resolvable:$true] %s330_s23 }
  0x60   : > { %s1355_s9 = scalar_lea.hbm %s1687_s18, 256  ;;  %p1357_p9 = pneg %p1689_p10 }
  0x61   : > { %p1356_p7 = scmp.ne.s32.totalorder %s1687_s18, %s1355_s9  ;;  %s1360_s29 = scalar_lea.hbm %s1867_s0, 768 }
  0x62   : > { %p1361_p1 = scmp.lt.u32.totalorder %s1687_s18, %s1867_s0  ;;  %p1362_p2 = scmp.lt.u32.totalorder %s1360_s29, %s1355_s9 }
  0x63   : > { %p1358_p11 = pnand %p1357_p9, %p1356_p7  ;;  %p1364_p8 = scmp.lt.u32.totalorder %s1355_s9, %s1687_s18 }
  0x64   : > { %p1363_p4 = por %p1362_p2, %p1361_p1 }
  0x65   : > { %p1359_p13 = pneg %p1358_p11 }
  0x66   : > { %p1365_p12 = por %p1364_p8, %p1363_p4 }
  0x68   : > { %p1366_p6 = pnand %p1365_p12, %p1359_p13 }
  0x6a   : > { %1369 = shalt.err (!%p1366_p6)
}
  0x6b   : > { %s1370_s28 = scalar_lea.vmem %s1693_s23, 256  ;;  %s1466_s26 = smov [#allocation2]  }
  0x6c   : > { %p1371_p0 = scmp.ne.s32.totalorder %s1693_s23, %s1370_s28  ;;  %s1375_s21 = sshll.u32 %s1466_s26, 4  ;;  %s1376_s21 = int_to_ptr.vmem [resolvable:$false] %s1375_s21 }
  0x6d   : > { %s1377_s20 = scalar_lea.vmem %s1376_s21, 512  ;;  %p1378_p11 = scmp.lt.s32.totalorder %s1693_s23, %s1376_s21 }
  0x6e   : > { %p1373_p3 = pnand %p1371_p0, %p1357_p9  ;;  %p1379_p1 = scmp.lt.s32.totalorder %s1377_s20, %s1370_s28 }
  0x70   : > { %p1374_p7 = pneg %p1373_p3  ;;  %p1380_p2 = por %p1379_p1, %p1378_p11 }
  0x72   : > { %p1381_p4 = pnand %p1380_p2, %p1374_p7 }
  0x74   : > { %1384 = shalt.err (!%p1381_p4)
}
  0x75   : > { %s1467_s9 = smov 128   ;;  %s1468_s30 = smov 8  }
  0x76   : > { %1196 = dma.hbm_to_vmem [thread:$0]  (!%p1689_p10), %s1687_s18, 256, %s1693_s23, %s1695_s22, %s1467_s9, %s1467_s9, %s1468_s30  }
  0x77   : > { %p1894_p9 = scmp.ne.s32.totalorder %s1888_s17, 0 }
  0x78   : > { %s1726_s29 = sand.u32 (!%p1894_p9), 1, %s1451_s10   ;;  %p1895_p13 = scmp.ne.s32.totalorder (!%p1894_p9), %s1885_s15, 0 }
  0x79   : > { %342 = sbr.rel (%p1894_p9) target bundleno = 1903 (0x76f), region = 56  ;;  %s1046_s24 = sshll.u32 (!%p1894_p9), %s1726_s29, 4 }
  0x7a   : > { %s345_s25 = scalar_lea.sflag (!%p1894_p9), [#allocation3], %s1726_s29  ;;  %s348_s28 = scalar_lea.vmem (!%p1894_p9), [#allocation2], %s1046_s24 }
  0x80   : > { %1430 = dma.done.wait (%p1895_p13), %s345_s25, 256  }
  0x81   : > { %1432 = vsyncadd (%p1895_p13), %s345_s25, 4294967040  ;;  %p1896_p8 = scmp.eq.s32.totalorder %s1546_s13, 0 }
  0x83   : > { %1434 = dma.done.wait (%p1896_p8), [#allocation6], 512   ;;  %p1897_p10 = pmov %p1896_p8 }
  0x84   : > { %p1898_p12 = pmov %p1896_p8 }
  0x85   : > { %1436 = vsyncadd (%p1897_p10), [#allocation6], 4294966784 }
  0x86   : > { %1438 = dma.done.wait (%p1898_p12), [#allocation9], 512   ;;  %p1899_p6 = pmov %p1896_p8 }
  0x87   : > { %v1469_v0 = vmov 0.0   ;;  %vm1470_vm0 = vmmov 0   ;;  %v1253_v1 = vld [vmem:[#allocation5] sm:$0xff]   ;;  %v1254_v2 = vld [vmem:[#allocation5 + $0x8] sm:$0xff]   ;;  %vm424_vm1 = vcmask 261120   ;;  %s1471_s18 = smov 96  }
  0x88   : > { %1440 = vsyncadd (%p1899_p6), [#allocation9], 4294966784  ;;  %1107 = vmatprep.subr.bf16.mxu0 %v1469_v0  ;;  %1111 = vmatprep.mubr.msk.bf16.mxu0 %vm1470_vm0, %v1469_v0  ;;  %v1748_v3 = vld [vmem:[%s348_s28] sm:$0xff]  ;;  %v1750_v4 = vld [vmem:[%s348_s28 + $0x8] sm:$0xff]  ;;  %vm569_vm2 = vcmask 64512   ;;  %s1472_s23 = smov 64  }
  0x89   : > { %1115 = vmatprep.subr.bf16.mxu1 %v1469_v0  ;;  %1117 = vmatprep.mubr.msk.bf16.mxu1 %vm1470_vm0, %v1469_v0  ;;  %v400_v5 = vpack.c.bf16 %v1750_v4, %v1748_v3  ;;  %v1051_v6 = vld [vmem:[%s1869_s2] ss:$0 sm:$0xff]  ;;  %vm599_vm3 = vcmask 1043456   ;;  %v1255_v51 = vld [vmem:[#allocation7] sm:$0xff]   ;;  %v1256_v52 = vld [vmem:[#allocation7 + $0x8] sm:$0xff]   ;;  %vm871_vm4 = vcmask 523264  }
  0x8a   : > { %1108 = vmatpush3.bf16.msra.mxu0 %v1253_v1  ;;  %v1257_v62 = vld [vmem:[%s1872_s5] sm:$0xff]   ;;  %v1258_v63 = vld [vmem:[%s1872_s5 + $0x8] sm:$0xff]   ;;  %s1050_s25 = sshll.u32 %s1726_s29, 3  ;;  %s1079_s19 = sshll.u32 %s1546_s13, 7 }
  0x8b   : > { %1109 = vmatprep.subr.bf16.mxu0 %v1469_v0  ;;  %v1259_v1 = vld [vmem:[#allocation8] sm:$0xff]   ;;  %s394_s17 = scalar_lea.vmem [#allocation10], %s1050_s25  ;;  %s1900_s21 = sld [smem:[#allocation17_spill]] }
  0x8c   : > { %s921_s9 = scalar_lea.sflag [#allocation4], %s1726_s29  ;;  %s1473_s13 = smov [#allocation10]  }
  0x8d   : > { %s1389_s24 = sshll.u32 %s1473_s13, 4  ;;  %s1390_s24 = int_to_ptr.vmem [resolvable:$false] %s1389_s24 }
  0x8e   : > { %1110 = vmatpush3.bf16.msra.mxu0 %v1254_v2  ;;  %v1260_v2 = vld [vmem:[#allocation8 + $0x8] sm:$0xff]   ;;  %s1391_s25 = scalar_lea.vmem %s1390_s24, 256 }
  0x8f   : > { %1121 = vmatprep.subr.bf16.mxu0 %v1469_v0 }
  0x91   : > { %1112 = vmatmul.mubr.msk.bf16.vlgmr.msra.gmra.mrb[0].mxu0 %vm424_vm1, %v400_v5  ;;  %v1059_v5 = vld [vmem:[%s1871_s4] ss:$0 sm:$0xff]  ;;  %s1822_s20 = scalar_lea.hbm %s1900_s21, %s1079_s19 }
  0x92   : > { %1123 = vmatprep.mubr.msk.bf16.mxu0 %vm1470_vm0, %v1469_v0 }
 0x164   : > { %v462_v7 = vpop.f32.mrb[0].mxu0 }
 0x165   : > { %v463_v8 = vadd.f32 %v1051_v6, %v462_v7  ;;  %v1113_v9 = vpop.f32.mrb[1].mxu0 }
 0x166   : > { %v465_v10 = vpop.f32.mrb[2].mxu0 }
 0x167   : > { %v469_v11 = vpack.c.bf16 %v463_v8, %v463_v8  ;;  %v466_v12 = vadd.f32 %v1051_v6, %v465_v10  ;;  %v1114_v13 = vpop.f32.mrb[3].mxu0 }
 0x169   : > { %472 = vrot.lane.b32.xlu0 %v469_v11, %s1471_s18  ;;  %v470_v14 = vpack.c.bf16 %v466_v12, %v466_v12 }
 0x16d   : > { %521 = vrot.lane.b32.xlu0 %v470_v14, %s1471_s18  ;;  %s934_s18 = sshll.u32 %s394_s17, 4  ;;  %s1817_s18 = int_to_ptr.vmem [resolvable:$true] %s934_s18 }
 0x16e   : > { %s1385_s30 = scalar_lea.vmem %s1817_s18, 128  ;;  %p1392_p11 = scmp.lt.s32.totalorder %s1817_s18, %s1390_s24 }
 0x16f   : > { %p1386_p0 = scmp.ne.s32.totalorder %s1817_s18, %s1385_s30  ;;  %p1393_p1 = scmp.lt.s32.totalorder %s1391_s25, %s1385_s30 }
 0x171   : > { %p1387_p3 = pnand %p1386_p0, %p1678_p5  ;;  %p1394_p2 = por %p1393_p1, %p1392_p11 }
 0x173   : > { %p1388_p7 = pneg %p1387_p3 }
 0x175   : > { %p1395_p4 = pnand %p1394_p2, %p1388_p7 }
 0x1db   : > { %v473_v15 = vpop.permute.xlu0 %472 }
 0x1dc   : > { %v478_v16 = vsel %vm424_vm1, %v473_v15, 0  ;;  %v1261_v15 = vld [vmem:[#allocation8 + $0x10] sm:$0xff]  }
 0x1dd   : > { %1116 = vmatpush3.bf16.xpose.msra.mxu1 %v478_v16  ;;  %v1262_v16 = vld [vmem:[#allocation8 + $0x18] sm:$0xff]  }
 0x1de   : > { %1127 = vmatprep.subr.bf16.mxu1 %v1469_v0 }
 0x1df   : > { %v522_v17 = vpop.permute.xlu0 %521 }
 0x1e0   : > { %v527_v18 = vsel %vm424_vm1, %v522_v17, 0  ;;  %v1063_v17 = vld [vmem:[%s1873_s6] ss:$0 sm:$0xff] }
 0x1e1   : > { %1122 = vmatpush3.bf16.xpose.msra.mxu0 %v527_v18 }
 0x1e2   : > { %1133 = vmatprep.subr.bf16.mxu0 %v1469_v0 }
 0x1e4   : > { %1118 = vmatmul.mubr.msk.bf16.vlgmr.msra.gmra.mrb[0].mxu1 %vm424_vm1, %v469_v11 }
 0x1e5   : > { %1129 = vmatprep.mubr.msk.bf16.mxu1 %vm1470_vm0, %v1469_v0 }
 0x1e8   : > { %1124 = vmatmul.mubr.msk.bf16.vlgmr.msra.gmra.mrb[4].mxu0 %vm424_vm1, %v470_v14 }
 0x1e9   : > { %1135 = vmatprep.mubr.msk.bf16.mxu0 %vm1470_vm0, %v1469_v0 }
 0x2b7   : > { %v514_v19 = vpop.f32.mrb[0].mxu1 }
 0x2b8   : > { %v1119_v20 = vpop.f32.mrb[1].mxu1  ;;  %v570_v21 = vsel %vm569_vm2, %v514_v19, -inf }
 0x2b9   : > { %571 = vmax.xlane.f32.xlu1 %v570_v21  ;;  %v517_v22 = vpop.f32.mrb[2].mxu1 }
 0x2ba   : > { %v1120_v23 = vpop.f32.mrb[3].mxu1 }
 0x2bb   : > { %v563_v24 = vpop.f32.mrb[4].mxu0 }
 0x2bc   : > { %v1125_v25 = vpop.f32.mrb[5].mxu0  ;;  %v573_v26 = vsel %vm569_vm2, %v563_v24, -inf }
 0x2bd   : > { %574 = vmax.xlane.f32.xlu1 %v573_v26  ;;  %v566_v27 = vpop.f32.mrb[6].mxu0 }
 0x2be   : > { %v1126_v28 = vpop.f32.mrb[7].mxu0 }
 0x2ce   : > { %594 = vrot.lane.b32.xlu1 %v469_v11, %s1472_s23 }
 0x346   : > { %v572_v29 = vpop.xlane.xlu1 %571 }
 0x347   : > { %v576_v30 = vsub.f32 %v514_v19, %v572_v29 }
 0x349   : > { %v578_v31 = vmul.f32 1.442695, %v576_v30 }
 0x34a   : > { %v575_v32 = vpop.xlane.xlu1 %574 }
 0x34b   : > { %1263 = vpow2.f32 %v578_v31  ;;  %v577_v33 = vsub.f32 %v563_v24, %v575_v32 }
 0x34d   : > { %v580_v34 = vmul.f32 1.442695, %v577_v33 }
 0x34e   : > { %v595_v35 = vpop.permute.xlu1 %594 }
 0x34f   : > { %1265 = vpow2.f32 %v580_v34  ;;  %v601_v36 = vsel %vm599_vm3, %v595_v35, 0 }
 0x350   : > { %1128 = vmatpush3.bf16.msra.mxu1 %v601_v36 }
 0x351   : > { %1139 = vmatprep.subr.bf16.mxu1 %v1469_v0 }
 0x355   : > { %v1264_v37 = vpop.eup %1263 }
 0x356   : > { %v582_v38 = vsel %vm569_vm2, %v1264_v37, 0.0 }
 0x357   : > { %583 = vadd.xlane.f32.xlu0 %v582_v38 }
 0x359   : > { %v1266_v39 = vpop.eup %1265 }
 0x35a   : > { %v585_v40 = vsel %vm569_vm2, %v1266_v39, 0.0 }
 0x35b   : > { %586 = vadd.xlane.f32.xlu1 %v585_v40 }
 0x36c   : > { %643 = vrot.lane.b32.xlu1 %v470_v14, %s1472_s23 }
 0x3e4   : > { %v584_v41 = vpop.xlane.xlu0 %583 }
 0x3e5   : > { %1267 = vrcp.f32 %v584_v41 }
 0x3e8   : > { %v587_v42 = vpop.xlane.xlu1 %586 }
 0x3e9   : > { %1269 = vrcp.f32 %v587_v42 }
 0x3ec   : > { %v644_v43 = vpop.permute.xlu1 %643 }
 0x3ed   : > { %v649_v44 = vsel %vm599_vm3, %v644_v43, 0 }
 0x3ee   : > { %1134 = vmatpush3.bf16.msra.mxu0 %v649_v44 }
 0x3ef   : > { %v1268_v45 = vpop.eup %1267  ;;  %1147 = vmatprep.subr.bf16.mxu0 %v1469_v0 }
 0x3f0   : > { %v590_v46 = vmul.f32 %v1268_v45, %v1264_v37 }
 0x3f2   : > { %v592_v47 = vpack.c.bf16 %v590_v46, %v590_v46 }
 0x3f3   : > { %v1270_v48 = vpop.eup %1269 }
 0x3f4   : > { %v591_v49 = vmul.f32 %v1270_v48, %v1266_v39  ;;  %1130 = vmatmul.mubr.msk.bf16.vlgmr.msra.gmra.mrb[4].mxu1 %vm569_vm2, %v592_v47 }
 0x3f5   : > { %1143 = vmatprep.mubr.msk.bf16.mxu1 %vm1470_vm0, %v1469_v0  ;;  %1140 = vmatpush3.bf16.msra.mxu1 %v1255_v51 }
 0x3f6   : > { %v593_v50 = vpack.c.bf16 %v591_v49, %v591_v49  ;;  %1141 = vmatprep.subr.bf16.mxu1 %v1469_v0 }
 0x3f8   : > { %1136 = vmatmul.mubr.msk.bf16.vlgmr.msra.gmra.mrb[8].mxu0 %vm569_vm2, %v593_v50 }
 0x3f9   : > { %1151 = vmatprep.mubr.msk.bf16.mxu0 %vm1470_vm0, %v1469_v0  ;;  %1142 = vmatpush3.bf16.msra.mxu1 %v1256_v52 }
 0x3fa   : > { %1155 = vmatprep.subr.bf16.mxu1 %v1469_v0  ;;  %1148 = vmatpush3.bf16.msra.mxu0 %v1257_v62 }
 0x3fb   : > { %1149 = vmatprep.subr.bf16.mxu0 %v1469_v0 }
 0x3fe   : > { %1150 = vmatpush3.bf16.msra.mxu0 %v1258_v63 }
 0x4c7   : > { %v637_v53 = vpop.f32.mrb[4].mxu1 }
 0x4c8   : > { %v1131_v54 = vpop.f32.mrb[5].mxu1 }
 0x4c9   : > { %v640_v55 = vpop.f32.mrb[6].mxu1 }
 0x4ca   : > { %v1132_v56 = vpop.f32.mrb[7].mxu1 }
 0x4cb   : > { %v685_v57 = vpop.f32.mrb[8].mxu0 }
 0x4cc   : > { %v691_v58 = vpack.c.bf16 %v685_v57, %v637_v53  ;;  %v1137_v59 = vpop.f32.mrb[9].mxu0 }
 0x4cd   : > { %v688_v60 = vpop.f32.mrb[10].mxu0 }
 0x4ce   : > { %v1138_v61 = vpop.f32.mrb[11].mxu0  ;;  %1144 = vmatmul.mubr.msk.bf16.vlgmr.msra.gmra.mrb[8].mxu1 %vm424_vm1, %v691_v58 }
 0x4cf   : > { %1163 = vmatprep.mubr.msk.bf16.mxu1 %vm1470_vm0, %v1469_v0  ;;  %1156 = vmatpush3.bf16.msra.mxu1 %v1259_v1 }
 0x4d0   : > { %1157 = vmatprep.subr.bf16.mxu1 %v1469_v0 }
 0x4d3   : > { %1158 = vmatpush3.bf16.msra.mxu1 %v1260_v2 }
 0x4d4   : > { %1159 = vmatprep.subr.bf16.mxu1 %v1469_v0 }
 0x4d7   : > { %1160 = vmatpush3.bf16.msra.mxu1 %v1261_v15 }
 0x4d8   : > { %1161 = vmatprep.subr.bf16.mxu1 %v1469_v0  ;;  %v1067_v0 = vld [vmem:[%s1875_s8] ss:$0 sm:$0xff] }
 0x4db   : > { %1162 = vmatpush3.bf16.msra.mxu1 %v1262_v16 }
 0x5a1   : > { %v752_v6 = vpop.f32.mrb[8].mxu1 }
 0x5a2   : > { %v753_v7 = vadd.f32 %v1059_v5, %v752_v6  ;;  %v1145_v8 = vpop.f32.mrb[9].mxu1 }
 0x5a3   : > { %v755_v9 = vpop.f32.mrb[10].mxu1 }
 0x5a4   : > { %v756_v10 = vadd.f32 %v1059_v5, %v755_v9  ;;  %v1146_v11 = vpop.f32.mrb[11].mxu1  ;;  %v759_v12 = vadd.f32 %v753_v7, %v1748_v3 }
 0x5a6   : > { %v760_v13 = vadd.f32 %v756_v10, %v1750_v4 }
 0x5a8   : > { %v761_v14 = vpack.c.bf16 %v760_v13, %v759_v12 }
 0x5aa   : > { %1152 = vmatmul.mubr.msk.bf16.vlgmr.msra.gmra.mrb[12].mxu0 %vm424_vm1, %v761_v14 }
 0x67d   : > { %v822_v18 = vpop.f32.mrb[12].mxu0 }
 0x67e   : > { %v823_v19 = vadd.f32 %v1063_v17, %v822_v18  ;;  %v1153_v20 = vpop.f32.mrb[13].mxu0 }
 0x67f   : > { %v825_v3 = vpop.f32.mrb[14].mxu0 }
 0x680   : > { %v826_v4 = vadd.f32 %v1063_v17, %v825_v3  ;;  %v1154_v21 = vpop.f32.mrb[15].mxu0  ;;  %v829_v22 = vmax.f32 %v823_v19, 0.0 }
 0x682   : > { %v830_v23 = vmax.f32 %v826_v4, 0.0 }
 0x684   : > { %v831_v24 = vpack.c.bf16 %v830_v23, %v829_v22 }
 0x686   : > { %1164 = vmatmul.mubr.msk.bf16.vlgmr.msra.gmra.mrb[12].mxu1 %vm871_vm4, %v831_v24 }
 0x759   : > { %v909_v25 = vpop.f32.mrb[12].mxu1 }
 0x75a   : > { %v1165_v26 = vpop.f32.mrb[13].mxu1  ;;  %v910_v28 = vadd.f32 %v1067_v0, %v909_v25 }
 0x75b   : > { %v912_v27 = vpop.f32.mrb[14].mxu1 }
 0x75c   : > { %v913_v29 = vadd.f32 %v1067_v0, %v912_v27  ;;  %v1166_v30 = vpop.f32.mrb[15].mxu1 }
 0x75e   : > { %v1083_v31 = vpack.c.bf16 %v913_v29, %v910_v28 }
 0x760   : > { %1084 = vst [vmem:[%s394_s17] sm:$0xff] %v1083_v31  }
 0x761   : > { %1398 = shalt.err (!%p1395_p4)
}
 0x762   : > { %s1399_s28 = scalar_lea.hbm %s1822_s20, 128  ;;  %s1403_s19 = scalar_lea.hbm %s1900_s21, 384 }
 0x763   : > { %p1400_p9 = scmp.ne.s32.totalorder %s1822_s20, %s1399_s28  ;;  %p1404_p10 = scmp.lt.u32.totalorder %s1822_s20, %s1900_s21 }
 0x764   : > { %p1405_p12 = scmp.lt.u32.totalorder %s1403_s19, %s1399_s28  ;;  %p1407_p0 = scmp.lt.u32.totalorder %s1399_s28, %s1822_s20 }
 0x765   : > { %p1401_p13 = pnand %p1400_p9, %p1678_p5 }
 0x766   : > { %p1406_p6 = por %p1405_p12, %p1404_p10 }
 0x767   : > { %p1402_p8 = pneg %p1401_p13 }
 0x768   : > { %p1408_p3 = por %p1407_p0, %p1406_p6 }
 0x76a   : > { %p1409_p7 = pnand %p1408_p3, %p1402_p8 }
 0x76c   : > { %1412 = shalt.err (!%p1409_p7)
}
 0x76d   : > { %s1474_s30 = smov 4  }
 0x76e   : > { %1181 = dma.vmem_to_hbm [thread:$0]  (%p1678_p5), %s1817_s18, 128, %s1822_s20, %s921_s9, %s1472_s23, %s1472_s23, %s1474_s30  }
 0x76f PF: > { %s1901_s13 = sld [smem:[#allocation15_spill]]  ;;  %s1902_s24 = sld [smem:[#allocation16_spill]] }
 0x770   : > { %p1208_p11 = scmp.ge.s32.totalorder %s1459_s12, 2 }
 0x775   : > { %s949_s25 = sand.u32 1, %s1901_s13   ;;  %p1903_p1 = scmp.ne.s32.totalorder %s1902_s24, 0 }
 0x776   : > { %s950_s28 = scalar_lea.sflag [#allocation4], %s949_s25 }
 0x777   : > { %p1198_p2 = pnand %p1208_p11, %p1903_p1 }
 0x779   : > { %1442 = dma.done.wait (!%p1198_p2), %s950_s28, 128  }
 0x77a   : > { %1444 = vsyncadd (!%p1198_p2), %s950_s28, 4294967168  ;;  %p24_p4 = scmp.ge.s32.totalorder %s1664_s14, 5   ;;  %s1904_s30 = smov %s1451_s10 }
 0x77b   : > { %s1905_s10 = smov %s1455_s11  ;;  %s1906_s11 = smov %s1674_s16 }
 0x77c   : > { %s1907_s12 = smov %s1664_s14  ;;  %26 = sbr.rel (!%p24_p4) target bundleno = 9 (0x9), region = 113 }
 0x783   :  { %955 = vsyncpa [#allocation3], 1 }
 0x784   :  { %957 = vsyncpa [#allocation3 + $0x1], 1 }
 0x785   :  { %958 = vsyncpa [#allocation6], 1 }
 0x786   :  { %959 = vsyncpa [#allocation9], 1 }
 0x787   :  { %960 = vsyncpa [#allocation4], 1 }
 0x788   :  { %962 = vsyncpa [#allocation4 + $0x1], 1 }

</bundles_post_ra>
